<compile_context>
chip_gen: v7x
topology: tpu7x:2x2x1
jax: 0.10.0
libtpu: 0.0.40
codegen_flags: <defaults>
</compile_context>

<pallas_src>
import functools
import math
from dataclasses import dataclass

import numpy as np
import jax
import jax.numpy as jnp
from jax.experimental import pallas as pl
from jax.experimental.pallas import tpu as pltpu


# ---------------------------------------------------------------------------
# Config (only the fields AECFLoss.forward actually uses).
# ---------------------------------------------------------------------------
@dataclass
class AECFLossConfig:
    task_type: str = "classification"
    focal_alpha: float = 0.25
    focal_gamma: float = 2.0
    label_smoothing: float = 0.05
    ece_penalty_coeff: float = 0.5
    l2_logits_coeff: float = 0.0001
    entropy_reg: bool = True
    entropy_free_epochs: int = 0
    entropy_warmup_epochs: int = 5
    entropy_max_lambda: float = 0.1


# ---------------------------------------------------------------------------
# Constants / layout of the partial-sum output slab.
# ---------------------------------------------------------------------------
_LANES = 128
_N_BINS = 15
_ROW_FOCAL = 0                      # per-lane partial sum of focal BCE
_ROW_L2 = 1                         # per-lane partial sum of logits^2
_ROW_CNT = 2                        # 15 rows: per-lane bin counts
_ROW_CONF = _ROW_CNT + _N_BINS      # 15 rows: per-lane sum of conf in bin
_ROW_CORR = _ROW_CONF + _N_BINS     # 15 rows: per-lane sum of correct in bin
_STATS_ROWS = _ROW_CORR + _N_BINS   # 47
_STATS_ROWS_PAD = 48                # pad to a multiple of 8 sublanes

# Bin edges exactly as torch.linspace(0, 1, 16) in float32.
_BIN_EDGES = tuple(float(v) for v in np.linspace(0.0, 1.0, _N_BINS + 1, dtype=np.float32))


def _cdiv(a: int, b: int) -> int:
    return (a + b - 1) // b


def _round_up(a: int, b: int) -> int:
    return _cdiv(a, b) * b


def _pow(x, exponent: float):
    """Same formulation used in kernel and reference (gamma=2.0 fast path)."""
    e = float(exponent)
    if e == 2.0:
        return x * x
    if e == 1.0:
        return x
    return jnp.power(x, e)


def _entropy_lambda(cfg: AECFLossConfig, epoch: int, max_epochs: int) -> float:
    """Python-scalar lambda schedule, mirroring _compute_entropy_loss."""
    if epoch < cfg.entropy_free_epochs:
        return 0.0
    warmup_progress = min(1.0, (epoch - cfg.entropy_free_epochs) / max(1, cfg.entropy_warmup_epochs))
    lam = cfg.entropy_max_lambda * warmup_progress
    decay_start = int(0.9 * max_epochs)
    if epoch >= decay_start:
        decay_progress = (epoch - decay_start) / max(1, max_epochs - decay_start)
        lam *= 0.5 * (1 + math.cos(math.pi * decay_progress))
    return lam


# ---------------------------------------------------------------------------
# Main fused kernel: focal BCE sum, logits^2 sum, and 15-bin ECE statistics.
# ---------------------------------------------------------------------------
def _aecf_stats_kernel(logits_ref, targets_ref, stats_ref, *,
                       n_valid, block_rows, alpha, gamma, label_smoothing, bin_edges):
    i = pl.program_id(0)

    @pl.when(i == 0)
    def _init():
        stats_ref[...] = jnp.zeros_like(stats_ref)

    x = logits_ref[...].astype(jnp.float32)      # (block_rows, 128)
    t = targets_ref[...].astype(jnp.float32)

    # Mask for padding elements (static n_valid, in-kernel iota -> no extra HBM traffic).
    row_i = jax.lax.broadcasted_iota(jnp.int32, x.shape, 0)
    lane_i = jax.lax.broadcasted_iota(jnp.int32, x.shape, 1)
    gidx = i * (block_rows * _LANES) + row_i * _LANES + lane_i
    valid = gidx < n_valid
    validf = valid.astype(jnp.float32)

    p = jax.nn.sigmoid(x)
    ts = t * (1.0 - label_smoothing) + 0.5 * label_smoothing
    log_p = jnp.log(p + 1e-8)
    log_np = jnp.log((1.0 - p) + 1e-8)
    # pos_weight == 1.0 (config.label_frequencies is None in the default config).
    # TODO(synk): per-class pos_weight from label_frequencies is not ported.
    focal = (-alpha * _pow(1.0 - p, gamma) * ts * log_p
             - (1.0 - alpha) * _pow(p, gamma) * (1.0 - ts) * log_np)

    stats_ref[_ROW_FOCAL:_ROW_FOCAL + 1, :] += jnp.sum(focal * validf, axis=0, keepdims=True)
    stats_ref[_ROW_L2:_ROW_L2 + 1, :] += jnp.sum(x * x * validf, axis=0, keepdims=True)

    correct = (t != 0.0).astype(jnp.float32)     # targets.bool().float()
    for b in range(_N_BINS):                     # static unroll: 15 bins, VPU/XLU work only
        lo = bin_edges[b]
        hi = bin_edges[b + 1]
        in_bin = jnp.logical_and(jnp.logical_and(p > lo, p <= hi), valid)
        inb = in_bin.astype(jnp.float32)
        stats_ref[_ROW_CNT + b:_ROW_CNT + b + 1, :] += jnp.sum(inb, axis=0, keepdims=True)
        stats_ref[_ROW_CONF + b:_ROW_CONF + b + 1, :] += jnp.sum(p * inb, axis=0, keepdims=True)
        stats_ref[_ROW_CORR + b:_ROW_CORR + b + 1, :] += jnp.sum(correct * inb, axis=0, keepdims=True)


def _aecf_classification_stats(logits, targets, cfg: AECFLossConfig, max_block_rows: int = 512):
    """Run the fused stats kernel over a lane-dense (rows, 128) repack of the inputs."""
    if logits.shape != targets.shape:
        raise ValueError(f"logits/targets shape mismatch: {logits.shape} vs {targets.shape}")

    n_valid = int(np.prod(logits.shape))
    total_rows = max(1, _cdiv(n_valid, _LANES))

    cap = max(8, (int(max_block_rows) // 8) * 8)           # multiple of 8 sublanes
    block_rows = min(cap, _round_up(total_rows, 8))
    padded_rows = _round_up(total_rows, block_rows)        # all grid blocks are full
    padded = padded_rows * _LANES
    grid = padded_rows // block_rows

    lf = jnp.pad(logits.reshape(-1).astype(jnp.float32), (0, padded - n_valid)).reshape(padded_rows, _LANES)
    tf = jnp.pad(targets.reshape(-1).astype(jnp.float32), (0, padded - n_valid)).reshape(padded_rows, _LANES)

    kernel = functools.partial(
        _aecf_stats_kernel,
        n_valid=n_valid,
        block_rows=block_rows,
        alpha=float(cfg.focal_alpha),
        gamma=float(cfg.focal_gamma),
        label_smoothing=float(cfg.label_smoothing),
        bin_edges=_BIN_EDGES,
    )

    stats = pl.pallas_call(
        kernel,
        out_shape=jax.ShapeDtypeStruct((_STATS_ROWS_PAD, _LANES), jnp.float32),
        grid=(grid,),
        in_specs=[
            pl.BlockSpec((block_rows, _LANES), lambda i: (i, 0)),
            pl.BlockSpec((block_rows, _LANES), lambda i: (i, 0)),
        ],
        # Output block resident across the (reduction) grid axis -> accumulator.
        out_specs=pl.BlockSpec((_STATS_ROWS_PAD, _LANES), lambda i: (0, 0)),
        compiler_params=pltpu.CompilerParams(
            dimension_semantics=("arbitrary",),     # accumulation across this axis
            vmem_limit_bytes=32 * 1024 * 1024,
        ),
    )(lf, tf)
    return stats, n_valid


def _finalize_classification(stats, n_valid, cfg: AECFLossConfig):
    """Tiny lane-sum + 15-bin combine (O(100) scalars) on the kernel's partial sums."""
    lane_sums = jnp.sum(stats, axis=1)                        # (48,)
    n = jnp.float32(n_valid)

    task_loss = lane_sums[_ROW_FOCAL] / n
    l2_loss = jnp.float32(cfg.l2_logits_coeff) * lane_sums[_ROW_L2] / n

    counts = lane_sums[_ROW_CNT:_ROW_CNT + _N_BINS]
    conf_sums = lane_sums[_ROW_CONF:_ROW_CONF + _N_BINS]
    corr_sums = lane_sums[_ROW_CORR:_ROW_CORR + _N_BINS]
    has = counts > 0
    safe = jnp.maximum(counts, 1.0)
    bin_conf = conf_sums / safe
    bin_acc = corr_sums / safe
    ece = jnp.sum(jnp.where(has, jnp.abs(bin_conf - bin_acc) * (counts / n), 0.0))
    ece_loss = jnp.float32(cfg.ece_penalty_coeff) * ece
    return task_loss, ece_loss, l2_loss


# ---------------------------------------------------------------------------
# Entropy regulariser kernel (tiny (B, M) input, single step).
# ---------------------------------------------------------------------------
def _entropy_sum_kernel(w_ref, o_ref):
    w = w_ref[...].astype(jnp.float32)
    s = jnp.sum(w * jnp.log(w + 1e-8), axis=1, keepdims=True)   # (B, 1)
    o_ref[...] = jnp.sum(s, axis=0, keepdims=True)              # (1, 1)


def _entropy_regularizer(weights, lam: float):
    if lam == 0.0:
        return jnp.float32(0.0)
    w = weights.astype(jnp.float32)
    if w.ndim == 1:
        w = w[None, :]
    B, M = w.shape
    s = pl.pallas_call(
        _entropy_sum_kernel,
        out_shape=jax.ShapeDtypeStruct((1, 1), jnp.float32),
        grid=(1,),
        in_specs=[pl.BlockSpec((B, M), lambda i: (0, 0))],
        out_specs=pl.BlockSpec((1, 1), lambda i: (0, 0)),
    )(w)
    # -lam * mean(-(w*log(w+eps)).sum(-1)) == lam * sum_all(w*log(w+eps)) / B
    return jnp.float32(lam) * s[0, 0] / jnp.float32(B)


# ---------------------------------------------------------------------------
# Public forward (mirrors AECFLoss.forward for classification).
# ---------------------------------------------------------------------------
def aecf_loss(logits, targets, weights=None, epoch: int = 0, max_epochs: int = 100,
              config: AECFLossConfig = None, max_block_rows: int = 512):
    cfg = config if config is not None else AECFLossConfig()

    if cfg.task_type != "classification":
        # TODO(synk): regression (MSE) and embedding (cross-entropy) task losses not ported to Pallas.
        raise NotImplementedError("Only the classification path of AECFLoss is implemented.")

    stats, n_valid = _aecf_classification_stats(logits, targets, cfg, max_block_rows=max_block_rows)
    task_loss, ece_loss, l2_loss = _finalize_classification(stats, n_valid, cfg)

    if cfg.entropy_reg and weights is not None:
        lam = _entropy_lambda(cfg, epoch, max_epochs)
        entropy_loss = _entropy_regularizer(weights, lam)
    else:
        entropy_loss = jnp.float32(0.0)

    total_loss = task_loss + entropy_loss + ece_loss + l2_loss
    sg = jax.lax.stop_gradient
    loss_components = {
        "task_loss": sg(task_loss),
        "entropy_loss": sg(entropy_loss),
        "ece_loss": sg(ece_loss),
        "l2_loss": sg(l2_loss),
        "total_loss": sg(total_loss),
    }
    return total_loss, loss_components


# ---------------------------------------------------------------------------
# Pure-JAX reference (mirrors the PyTorch math) for correctness checking.
# ---------------------------------------------------------------------------
def _reference_loss(logits, targets, weights, epoch, max_epochs, cfg: AECFLossConfig):
    alpha, gamma, ls = cfg.focal_alpha, cfg.focal_gamma, cfg.label_smoothing
    x = logits.astype(jnp.float32)
    t = targets.astype(jnp.float32)
    ts = t * (1.0 - ls) + 0.5 * ls
    p = jax.nn.sigmoid(x)
    focal = (-alpha * _pow(1.0 - p, gamma) * ts * jnp.log(p + 1e-8)
             - (1.0 - alpha) * _pow(p, gamma) * (1.0 - ts) * jnp.log(1.0 - p + 1e-8))
    task_loss = jnp.mean(focal)

    conf = p.reshape(-1)
    correct = (t != 0.0).astype(jnp.float32).reshape(-1)
    n = conf.size
    ece = jnp.float32(0.0)
    for b in range(_N_BINS):
        m = (conf > _BIN_EDGES[b]) & (conf <= _BIN_EDGES[b + 1])
        cnt = jnp.sum(m.astype(jnp.float32))
        bin_conf = jnp.sum(jnp.where(m, conf, 0.0)) / jnp.maximum(cnt, 1.0)
        bin_acc = jnp.sum(jnp.where(m, correct, 0.0)) / jnp.maximum(cnt, 1.0)
        ece = ece + jnp.where(cnt > 0, jnp.abs(bin_conf - bin_acc) * (cnt / n), 0.0)
    ece_loss = jnp.float32(cfg.ece_penalty_coeff) * ece
    l2_loss = jnp.float32(cfg.l2_logits_coeff) * jnp.mean(x * x)

    lam = _entropy_lambda(cfg, epoch, max_epochs)
    if cfg.entropy_reg and weights is not None:
        ent = -jnp.sum(weights.astype(jnp.float32) * jnp.log(weights.astype(jnp.float32) + 1e-8), axis=-1)
        entropy_loss = jnp.float32(-lam) * jnp.mean(ent)
    else:
        entropy_loss = jnp.float32(0.0)

    total = task_loss + entropy_loss + ece_loss + l2_loss
    comps = {"task_loss": task_loss, "entropy_loss": entropy_loss,
             "ece_loss": ece_loss, "l2_loss": l2_loss, "total_loss": total}
    return total, comps


if __name__ == "__main__":
    cfg = AECFLossConfig()
    key = jax.random.PRNGKey(0)
    k1, k2, k3 = jax.random.split(key, 3)

    # Shapes implied by the module: logits/targets [batch, num_classes], weights [batch, n_modalities].
    batch, num_classes, n_mod = 8, 80, 2
    logits = 2.0 * jax.random.normal(k1, (batch, num_classes), dtype=jnp.float32)
    targets = (jax.random.uniform(k2, (batch, num_classes)) < 0.3).astype(jnp.float32)
    w_raw = jax.random.uniform(k3, (batch, n_mod), minval=0.1, maxval=1.0)
    weights = w_raw / jnp.sum(w_raw, axis=-1, keepdims=True)

    total, comps = aecf_loss(logits, targets, weights, epoch=3, max_epochs=30, config=cfg)
    jax.block_until_ready(total)

    ref_total, ref_comps = _reference_loss(logits, targets, weights, 3, 30, cfg)
    for name in ref_comps:
        assert jnp.allclose(comps[name], ref_comps[name], rtol=1e-4, atol=1e-6), \
            (name, float(comps[name]), float(ref_comps[name]))
    assert jnp.allclose(total, ref_total, rtol=1e-4, atol=1e-6), (float(total), float(ref_total))

    # Second check: force a multi-step grid (exercises the pl.when init + accumulate path)
    # and the weights=None branch.
    batch2, classes2 = 32, 80
    logits2 = 1.5 * jax.random.normal(k3, (batch2, classes2), dtype=jnp.float32)
    targets2 = (jax.random.uniform(k1, (batch2, classes2)) < 0.5).astype(jnp.float32)
    total2, _ = aecf_loss(logits2, targets2, None, epoch=0, max_epochs=100,
                          config=cfg, max_block_rows=8)
    jax.block_until_ready(total2)
    ref_total2, _ = _reference_loss(logits2, targets2, None, 0, 100, cfg)
    assert jnp.allclose(total2, ref_total2, rtol=1e-4, atol=1e-6), (float(total2), float(ref_total2))

    print("KERNEL_OK")
</pallas_src>

<mosaic_0001>
module attributes {stable_mosaic.version = 11 : i64} {
  func.func @_aecf_stats_kernel(%arg0: i32, %arg1: memref<8x128xf32, #tpu.memory_space<vmem>>, %arg2: memref<8x128xf32, #tpu.memory_space<vmem>>, %arg3: memref<48x128xf32, #tpu.memory_space<vmem>>) attributes {dimension_semantics = [#tpu.dimension_semantics<arbitrary>], iteration_bounds = array<i64: 1>, scalar_prefetch = 0 : i64, scratch_operands = 0 : i64, tpu.core_type = #tpu.core_type<tc>, window_params = [{transform_indices = @transform_0, window_bounds = array<i64: 8, 128>}, {transform_indices = @transform_1, window_bounds = array<i64: 8, 128>}, {pipeline_mode = #tpu.pipeline_mode<synchronous>, transform_indices = @transform_2, window_bounds = array<i64: 48, 128>}]} {
    %c0_i32 = arith.constant 0 : i32
    %0 = arith.cmpi eq, %arg0, %c0_i32 : i32
    %1 = arith.extui %0 : i1 to i32
    %c0_i32_0 = arith.constant 0 : i32
    %2 = arith.cmpi ne, %1, %c0_i32_0 : i32
    scf.if %2 {
      %cst_233 = arith.constant 0.000000e+00 : f32
      %441 = vector.broadcast %cst_233 : f32 to vector<48x128xf32>
      %c0_234 = arith.constant 0 : index
      %c0_235 = arith.constant 0 : index
      %442 = vector.load %arg3[%c0_234, %c0_235] : memref<48x128xf32, #tpu.memory_space<vmem>>, vector<48x128xf32>
      tpu.vector_store %arg3[%c0_234, %c0_235], %441 {strides = array<i32>} : memref<48x128xf32, #tpu.memory_space<vmem>>, vector<48x128xf32>,
    } else {
    }
    %c0 = arith.constant 0 : index
    %c0_1 = arith.constant 0 : index
    %3 = vector.load %arg1[%c0, %c0_1] : memref<8x128xf32, #tpu.memory_space<vmem>>, vector<8x128xf32>
    %c0_2 = arith.constant 0 : index
    %c0_3 = arith.constant 0 : index
    %4 = vector.load %arg2[%c0_2, %c0_3] : memref<8x128xf32, #tpu.memory_space<vmem>>, vector<8x128xf32>
    %5 = tpu.iota {dimensions = array<i32: 0>} : vector<8x128xi32>
    %6 = tpu.iota {dimensions = array<i32: 1>} : vector<8x128xi32>
    %c1024_i32 = arith.constant 1024 : i32
    %7 = arith.muli %arg0, %c1024_i32 : i32
    %c128_i32 = arith.constant 128 : i32
    %8 = vector.broadcast %c128_i32 : i32 to vector<8x128xi32>
    %9 = arith.muli %5, %8 : vector<8x128xi32>
    %10 = vector.broadcast %7 : i32 to vector<8x128xi32>
    %11 = arith.addi %10, %9 : vector<8x128xi32>
    %12 = arith.addi %11, %6 : vector<8x128xi32>
    %c640_i32 = arith.constant 640 : i32
    %13 = vector.broadcast %c640_i32 : i32 to vector<8x128xi32>
    %14 = arith.cmpi slt, %12, %13 : vector<8x128xi32>
    %15 = arith.extui %14 : vector<8x128xi1> to vector<8x128xi32>
    %16 = arith.sitofp %15 : vector<8x128xi32> to vector<8x128xf32>
    %17 = arith.negf %3 : vector<8x128xf32>
    %18 = math.exp %17 : vector<8x128xf32>
    %cst = arith.constant 1.000000e+00 : f32
    %19 = vector.broadcast %cst : f32 to vector<8x128xf32>
    %20 = arith.addf %19, %18 : vector<8x128xf32>
    %21 = arith.divf %19, %20 : vector<8x128xf32>
    %cst_4 = arith.constant 0.949999988 : f32
    %22 = vector.broadcast %cst_4 : f32 to vector<8x128xf32>
    %23 = arith.mulf %4, %22 : vector<8x128xf32>
    %cst_5 = arith.constant 2.500000e-02 : f32
    %24 = vector.broadcast %cst_5 : f32 to vector<8x128xf32>
    %25 = arith.addf %23, %24 : vector<8x128xf32>
    %cst_6 = arith.constant 9.99999993E-9 : f32
    %26 = vector.broadcast %cst_6 : f32 to vector<8x128xf32>
    %27 = arith.addf %21, %26 : vector<8x128xf32>
    %28 = math.log %27 : vector<8x128xf32>
    %cst_7 = arith.constant 1.000000e+00 : f32
    %29 = vector.broadcast %cst_7 : f32 to vector<8x128xf32>
    %30 = arith.subf %29, %21 : vector<8x128xf32>
    %cst_8 = arith.constant 9.99999993E-9 : f32
    %31 = vector.broadcast %cst_8 : f32 to vector<8x128xf32>
    %32 = arith.addf %30, %31 : vector<8x128xf32>
    %33 = math.log %32 : vector<8x128xf32>
    %cst_9 = arith.constant 1.000000e+00 : f32
    %34 = vector.broadcast %cst_9 : f32 to vector<8x128xf32>
    %35 = arith.subf %34, %21 : vector<8x128xf32>
    %36 = arith.mulf %35, %35 : vector<8x128xf32>
    %cst_10 = arith.constant -2.500000e-01 : f32
    %37 = vector.broadcast %cst_10 : f32 to vector<8x128xf32>
    %38 = arith.mulf %37, %36 : vector<8x128xf32>
    %39 = arith.mulf %38, %25 : vector<8x128xf32>
    %40 = arith.mulf %39, %28 : vector<8x128xf32>
    %41 = arith.mulf %21, %21 : vector<8x128xf32>
    %cst_11 = arith.constant 7.500000e-01 : f32
    %42 = vector.broadcast %cst_11 : f32 to vector<8x128xf32>
    %43 = arith.mulf %42, %41 : vector<8x128xf32>
    %cst_12 = arith.constant 1.000000e+00 : f32
    %44 = vector.broadcast %cst_12 : f32 to vector<8x128xf32>
    %45 = arith.subf %44, %25 : vector<8x128xf32>
    %46 = arith.mulf %43, %45 : vector<8x128xf32>
    %47 = arith.mulf %46, %33 : vector<8x128xf32>
    %48 = arith.subf %40, %47 : vector<8x128xf32>
    %c0_13 = arith.constant 0 : index
    %c0_14 = arith.constant 0 : index
    %49 = vector.load %arg3[%c0_13, %c0_14] : memref<48x128xf32, #tpu.memory_space<vmem>>, vector<1x128xf32>
    %50 = arith.mulf %48, %16 : vector<8x128xf32>
    %cst_15 = arith.constant dense<0.000000e+00> : vector<128xf32>
    %51 = vector.multi_reduction <add>, %50, %cst_15 [0] : vector<8x128xf32> to vector<128xf32>
    %52 = vector.shape_cast %51 : vector<128xf32> to vector<1x128xf32>
    %53 = arith.addf %49, %52 : vector<1x128xf32>
    %c0_16 = arith.constant 0 : index
    %c0_17 = arith.constant 0 : index
    %54 = vector.load %arg3[%c0_16, %c0_17] : memref<48x128xf32, #tpu.memory_space<vmem>>, vector<1x128xf32>
    tpu.vector_store %arg3[%c0_16, %c0_17], %53 {strides = array<i32>} : memref<48x128xf32, #tpu.memory_space<vmem>>, vector<1x128xf32>,
    %c1 = arith.constant 1 : index
    %c0_18 = arith.constant 0 : index
    %55 = vector.load %arg3[%c1, %c0_18] : memref<48x128xf32, #tpu.memory_space<vmem>>, vector<1x128xf32>
    %56 = arith.mulf %3, %3 : vector<8x128xf32>
    %57 = arith.mulf %56, %16 : vector<8x128xf32>
    %cst_19 = arith.constant dense<0.000000e+00> : vector<128xf32>
    %58 = vector.multi_reduction <add>, %57, %cst_19 [0] : vector<8x128xf32> to vector<128xf32>
    %59 = vector.shape_cast %58 : vector<128xf32> to vector<1x128xf32>
    %60 = arith.addf %55, %59 : vector<1x128xf32>
    %c1_20 = arith.constant 1 : index
    %c0_21 = arith.constant 0 : index
    %61 = vector.load %arg3[%c1_20, %c0_21] : memref<48x128xf32, #tpu.memory_space<vmem>>, vector<1x128xf32>
    tpu.vector_store %arg3[%c1_20, %c0_21], %60 {strides = array<i32>} : memref<48x128xf32, #tpu.memory_space<vmem>>, vector<1x128xf32>,
    %cst_22 = arith.constant 0.000000e+00 : f32
    %62 = vector.broadcast %cst_22 : f32 to vector<8x128xf32>
    %63 = arith.cmpf one, %4, %62 : vector<8x128xf32>
    %64 = arith.extui %63 : vector<8x128xi1> to vector<8x128xi32>
    %65 = arith.sitofp %64 : vector<8x128xi32> to vector<8x128xf32>
    %cst_23 = arith.constant 0.000000e+00 : f32
    %66 = vector.broadcast %cst_23 : f32 to vector<8x128xf32>
    %67 = arith.cmpf ogt, %21, %66 : vector<8x128xf32>
    %cst_24 = arith.constant 0.0666666701 : f32
    %68 = vector.broadcast %cst_24 : f32 to vector<8x128xf32>
    %69 = arith.cmpf ole, %21, %68 : vector<8x128xf32>
    %70 = arith.andi %67, %69 : vector<8x128xi1>
    %71 = arith.andi %70, %14 : vector<8x128xi1>
    %72 = arith.extui %71 : vector<8x128xi1> to vector<8x128xi32>
    %73 = arith.sitofp %72 : vector<8x128xi32> to vector<8x128xf32>
    %c2 = arith.constant 2 : index
    %c0_25 = arith.constant 0 : index
    %74 = vector.load %arg3[%c2, %c0_25] : memref<48x128xf32, #tpu.memory_space<vmem>>, vector<1x128xf32>
    %cst_26 = arith.constant dense<0.000000e+00> : vector<128xf32>
    %75 = vector.multi_reduction <add>, %73, %cst_26 [0] : vector<8x128xf32> to vector<128xf32>
    %76 = vector.shape_cast %75 : vector<128xf32> to vector<1x128xf32>
    %77 = arith.addf %74, %76 : vector<1x128xf32>
    %c2_27 = arith.constant 2 : index
    %c0_28 = arith.constant 0 : index
    %78 = vector.load %arg3[%c2_27, %c0_28] : memref<48x128xf32, #tpu.memory_space<vmem>>, vector<1x128xf32>
    tpu.vector_store %arg3[%c2_27, %c0_28], %77 {strides = array<i32>} : memref<48x128xf32, #tpu.memory_space<vmem>>, vector<1x128xf32>,
    %c17 = arith.constant 17 : index
    %c0_29 = arith.constant 0 : index
    %79 = vector.load %arg3[%c17, %c0_29] : memref<48x128xf32, #tpu.memory_space<vmem>>, vector<1x128xf32>
    %80 = arith.mulf %21, %73 : vector<8x128xf32>
    %cst_30 = arith.constant dense<0.000000e+00> : vector<128xf32>
    %81 = vector.multi_reduction <add>, %80, %cst_30 [0] : vector<8x128xf32> to vector<128xf32>
    %82 = vector.shape_cast %81 : vector<128xf32> to vector<1x128xf32>
    %83 = arith.addf %79, %82 : vector<1x128xf32>
    %c17_31 = arith.constant 17 : index
    %c0_32 = arith.constant 0 : index
    %84 = vector.load %arg3[%c17_31, %c0_32] : memref<48x128xf32, #tpu.memory_space<vmem>>, vector<1x128xf32>
    tpu.vector_store %arg3[%c17_31, %c0_32], %83 {strides = array<i32>} : memref<48x128xf32, #tpu.memory_space<vmem>>, vector<1x128xf32>,
    %c32 = arith.constant 32 : index
    %c0_33 = arith.constant 0 : index
    %85 = vector.load %arg3[%c32, %c0_33] : memref<48x128xf32, #tpu.memory_space<vmem>>, vector<1x128xf32>
    %86 = arith.mulf %65, %73 : vector<8x128xf32>
    %cst_34 = arith.constant dense<0.000000e+00> : vector<128xf32>
    %87 = vector.multi_reduction <add>, %86, %cst_34 [0] : vector<8x128xf32> to vector<128xf32>
    %88 = vector.shape_cast %87 : vector<128xf32> to vector<1x128xf32>
    %89 = arith.addf %85, %88 : vector<1x128xf32>
    %c32_35 = arith.constant 32 : index
    %c0_36 = arith.constant 0 : index
    %90 = vector.load %arg3[%c32_35, %c0_36] : memref<48x128xf32, #tpu.memory_space<vmem>>, vector<1x128xf32>
    tpu.vector_store %arg3[%c32_35, %c0_36], %89 {strides = array<i32>} : memref<48x128xf32, #tpu.memory_space<vmem>>, vector<1x128xf32>,
    %cst_37 = arith.constant 0.0666666701 : f32
    %91 = vector.broadcast %cst_37 : f32 to vector<8x128xf32>
    %92 = arith.cmpf ogt, %21, %91 : vector<8x128xf32>
    %cst_38 = arith.constant 0.13333334 : f32
    %93 = vector.broadcast %cst_38 : f32 to vector<8x128xf32>
    %94 = arith.cmpf ole, %21, %93 : vector<8x128xf32>
    %95 = arith.andi %92, %94 : vector<8x128xi1>
    %96 = arith.andi %95, %14 : vector<8x128xi1>
    %97 = arith.extui %96 : vector<8x128xi1> to vector<8x128xi32>
    %98 = arith.sitofp %97 : vector<8x128xi32> to vector<8x128xf32>
    %c3 = arith.constant 3 : index
    %c0_39 = arith.constant 0 : index
    %99 = vector.load %arg3[%c3, %c0_39] : memref<48x128xf32, #tpu.memory_space<vmem>>, vector<1x128xf32>
    %cst_40 = arith.constant dense<0.000000e+00> : vector<128xf32>
    %100 = vector.multi_reduction <add>, %98, %cst_40 [0] : vector<8x128xf32> to vector<128xf32>
    %101 = vector.shape_cast %100 : vector<128xf32> to vector<1x128xf32>
    %102 = arith.addf %99, %101 : vector<1x128xf32>
    %c3_41 = arith.constant 3 : index
    %c0_42 = arith.constant 0 : index
    %103 = vector.load %arg3[%c3_41, %c0_42] : memref<48x128xf32, #tpu.memory_space<vmem>>, vector<1x128xf32>
    tpu.vector_store %arg3[%c3_41, %c0_42], %102 {strides = array<i32>} : memref<48x128xf32, #tpu.memory_space<vmem>>, vector<1x128xf32>,
    %c18 = arith.constant 18 : index
    %c0_43 = arith.constant 0 : index
    %104 = vector.load %arg3[%c18, %c0_43] : memref<48x128xf32, #tpu.memory_space<vmem>>, vector<1x128xf32>
    %105 = arith.mulf %21, %98 : vector<8x128xf32>
    %cst_44 = arith.constant dense<0.000000e+00> : vector<128xf32>
    %106 = vector.multi_reduction <add>, %105, %cst_44 [0] : vector<8x128xf32> to vector<128xf32>
    %107 = vector.shape_cast %106 : vector<128xf32> to vector<1x128xf32>
    %108 = arith.addf %104, %107 : vector<1x128xf32>
    %c18_45 = arith.constant 18 : index
    %c0_46 = arith.constant 0 : index
    %109 = vector.load %arg3[%c18_45, %c0_46] : memref<48x128xf32, #tpu.memory_space<vmem>>, vector<1x128xf32>
    tpu.vector_store %arg3[%c18_45, %c0_46], %108 {strides = array<i32>} : memref<48x128xf32, #tpu.memory_space<vmem>>, vector<1x128xf32>,
    %c33 = arith.constant 33 : index
    %c0_47 = arith.constant 0 : index
    %110 = vector.load %arg3[%c33, %c0_47] : memref<48x128xf32, #tpu.memory_space<vmem>>, vector<1x128xf32>
    %111 = arith.mulf %65, %98 : vector<8x128xf32>
    %cst_48 = arith.constant dense<0.000000e+00> : vector<128xf32>
    %112 = vector.multi_reduction <add>, %111, %cst_48 [0] : vector<8x128xf32> to vector<128xf32>
    %113 = vector.shape_cast %112 : vector<128xf32> to vector<1x128xf32>
    %114 = arith.addf %110, %113 : vector<1x128xf32>
    %c33_49 = arith.constant 33 : index
    %c0_50 = arith.constant 0 : index
    %115 = vector.load %arg3[%c33_49, %c0_50] : memref<48x128xf32, #tpu.memory_space<vmem>>, vector<1x128xf32>
    tpu.vector_store %arg3[%c33_49, %c0_50], %114 {strides = array<i32>} : memref<48x128xf32, #tpu.memory_space<vmem>>, vector<1x128xf32>,
    %cst_51 = arith.constant 0.13333334 : f32
    %116 = vector.broadcast %cst_51 : f32 to vector<8x128xf32>
    %117 = arith.cmpf ogt, %21, %116 : vector<8x128xf32>
    %cst_52 = arith.constant 2.000000e-01 : f32
    %118 = vector.broadcast %cst_52 : f32 to vector<8x128xf32>
    %119 = arith.cmpf ole, %21, %118 : vector<8x128xf32>
    %120 = arith.andi %117, %119 : vector<8x128xi1>
    %121 = arith.andi %120, %14 : vector<8x128xi1>
    %122 = arith.extui %121 : vector<8x128xi1> to vector<8x128xi32>
    %123 = arith.sitofp %122 : vector<8x128xi32> to vector<8x128xf32>
    %c4 = arith.constant 4 : index
    %c0_53 = arith.constant 0 : index
    %124 = vector.load %arg3[%c4, %c0_53] : memref<48x128xf32, #tpu.memory_space<vmem>>, vector<1x128xf32>
    %cst_54 = arith.constant dense<0.000000e+00> : vector<128xf32>
    %125 = vector.multi_reduction <add>, %123, %cst_54 [0] : vector<8x128xf32> to vector<128xf32>
    %126 = vector.shape_cast %125 : vector<128xf32> to vector<1x128xf32>
    %127 = arith.addf %124, %126 : vector<1x128xf32>
    %c4_55 = arith.constant 4 : index
    %c0_56 = arith.constant 0 : index
    %128 = vector.load %arg3[%c4_55, %c0_56] : memref<48x128xf32, #tpu.memory_space<vmem>>, vector<1x128xf32>
    tpu.vector_store %arg3[%c4_55, %c0_56], %127 {strides = array<i32>} : memref<48x128xf32, #tpu.memory_space<vmem>>, vector<1x128xf32>,
    %c19 = arith.constant 19 : index
    %c0_57 = arith.constant 0 : index
    %129 = vector.load %arg3[%c19, %c0_57] : memref<48x128xf32, #tpu.memory_space<vmem>>, vector<1x128xf32>
    %130 = arith.mulf %21, %123 : vector<8x128xf32>
    %cst_58 = arith.constant dense<0.000000e+00> : vector<128xf32>
    %131 = vector.multi_reduction <add>, %130, %cst_58 [0] : vector<8x128xf32> to vector<128xf32>
    %132 = vector.shape_cast %131 : vector<128xf32> to vector<1x128xf32>
    %133 = arith.addf %129, %132 : vector<1x128xf32>
    %c19_59 = arith.constant 19 : index
    %c0_60 = arith.constant 0 : index
    %134 = vector.load %arg3[%c19_59, %c0_60] : memref<48x128xf32, #tpu.memory_space<vmem>>, vector<1x128xf32>
    tpu.vector_store %arg3[%c19_59, %c0_60], %133 {strides = array<i32>} : memref<48x128xf32, #tpu.memory_space<vmem>>, vector<1x128xf32>,
    %c34 = arith.constant 34 : index
    %c0_61 = arith.constant 0 : index
    %135 = vector.load %arg3[%c34, %c0_61] : memref<48x128xf32, #tpu.memory_space<vmem>>, vector<1x128xf32>
    %136 = arith.mulf %65, %123 : vector<8x128xf32>
    %cst_62 = arith.constant dense<0.000000e+00> : vector<128xf32>
    %137 = vector.multi_reduction <add>, %136, %cst_62 [0] : vector<8x128xf32> to vector<128xf32>
    %138 = vector.shape_cast %137 : vector<128xf32> to vector<1x128xf32>
    %139 = arith.addf %135, %138 : vector<1x128xf32>
    %c34_63 = arith.constant 34 : index
    %c0_64 = arith.constant 0 : index
    %140 = vector.load %arg3[%c34_63, %c0_64] : memref<48x128xf32, #tpu.memory_space<vmem>>, vector<1x128xf32>
    tpu.vector_store %arg3[%c34_63, %c0_64], %139 {strides = array<i32>} : memref<48x128xf32, #tpu.memory_space<vmem>>, vector<1x128xf32>,
    %cst_65 = arith.constant 2.000000e-01 : f32
    %141 = vector.broadcast %cst_65 : f32 to vector<8x128xf32>
    %142 = arith.cmpf ogt, %21, %141 : vector<8x128xf32>
    %cst_66 = arith.constant 0.266666681 : f32
    %143 = vector.broadcast %cst_66 : f32 to vector<8x128xf32>
    %144 = arith.cmpf ole, %21, %143 : vector<8x128xf32>
    %145 = arith.andi %142, %144 : vector<8x128xi1>
    %146 = arith.andi %145, %14 : vector<8x128xi1>
    %147 = arith.extui %146 : vector<8x128xi1> to vector<8x128xi32>
    %148 = arith.sitofp %147 : vector<8x128xi32> to vector<8x128xf32>
    %c5 = arith.constant 5 : index
    %c0_67 = arith.constant 0 : index
    %149 = vector.load %arg3[%c5, %c0_67] : memref<48x128xf32, #tpu.memory_space<vmem>>, vector<1x128xf32>
    %cst_68 = arith.constant dense<0.000000e+00> : vector<128xf32>
    %150 = vector.multi_reduction <add>, %148, %cst_68 [0] : vector<8x128xf32> to vector<128xf32>
    %151 = vector.shape_cast %150 : vector<128xf32> to vector<1x128xf32>
    %152 = arith.addf %149, %151 : vector<1x128xf32>
    %c5_69 = arith.constant 5 : index
    %c0_70 = arith.constant 0 : index
    %153 = vector.load %arg3[%c5_69, %c0_70] : memref<48x128xf32, #tpu.memory_space<vmem>>, vector<1x128xf32>
    tpu.vector_store %arg3[%c5_69, %c0_70], %152 {strides = array<i32>} : memref<48x128xf32, #tpu.memory_space<vmem>>, vector<1x128xf32>,
    %c20 = arith.constant 20 : index
    %c0_71 = arith.constant 0 : index
    %154 = vector.load %arg3[%c20, %c0_71] : memref<48x128xf32, #tpu.memory_space<vmem>>, vector<1x128xf32>
    %155 = arith.mulf %21, %148 : vector<8x128xf32>
    %cst_72 = arith.constant dense<0.000000e+00> : vector<128xf32>
    %156 = vector.multi_reduction <add>, %155, %cst_72 [0] : vector<8x128xf32> to vector<128xf32>
    %157 = vector.shape_cast %156 : vector<128xf32> to vector<1x128xf32>
    %158 = arith.addf %154, %157 : vector<1x128xf32>
    %c20_73 = arith.constant 20 : index
    %c0_74 = arith.constant 0 : index
    %159 = vector.load %arg3[%c20_73, %c0_74] : memref<48x128xf32, #tpu.memory_space<vmem>>, vector<1x128xf32>
    tpu.vector_store %arg3[%c20_73, %c0_74], %158 {strides = array<i32>} : memref<48x128xf32, #tpu.memory_space<vmem>>, vector<1x128xf32>,
    %c35 = arith.constant 35 : index
    %c0_75 = arith.constant 0 : index
    %160 = vector.load %arg3[%c35, %c0_75] : memref<48x128xf32, #tpu.memory_space<vmem>>, vector<1x128xf32>
    %161 = arith.mulf %65, %148 : vector<8x128xf32>
    %cst_76 = arith.constant dense<0.000000e+00> : vector<128xf32>
    %162 = vector.multi_reduction <add>, %161, %cst_76 [0] : vector<8x128xf32> to vector<128xf32>
    %163 = vector.shape_cast %162 : vector<128xf32> to vector<1x128xf32>
    %164 = arith.addf %160, %163 : vector<1x128xf32>
    %c35_77 = arith.constant 35 : index
    %c0_78 = arith.constant 0 : index
    %165 = vector.load %arg3[%c35_77, %c0_78] : memref<48x128xf32, #tpu.memory_space<vmem>>, vector<1x128xf32>
    tpu.vector_store %arg3[%c35_77, %c0_78], %164 {strides = array<i32>} : memref<48x128xf32, #tpu.memory_space<vmem>>, vector<1x128xf32>,
    %cst_79 = arith.constant 0.266666681 : f32
    %166 = vector.broadcast %cst_79 : f32 to vector<8x128xf32>
    %167 = arith.cmpf ogt, %21, %166 : vector<8x128xf32>
    %cst_80 = arith.constant 0.333333343 : f32
    %168 = vector.broadcast %cst_80 : f32 to vector<8x128xf32>
    %169 = arith.cmpf ole, %21, %168 : vector<8x128xf32>
    %170 = arith.andi %167, %169 : vector<8x128xi1>
    %171 = arith.andi %170, %14 : vector<8x128xi1>
    %172 = arith.extui %171 : vector<8x128xi1> to vector<8x128xi32>
    %173 = arith.sitofp %172 : vector<8x128xi32> to vector<8x128xf32>
    %c6 = arith.constant 6 : index
    %c0_81 = arith.constant 0 : index
    %174 = vector.load %arg3[%c6, %c0_81] : memref<48x128xf32, #tpu.memory_space<vmem>>, vector<1x128xf32>
    %cst_82 = arith.constant dense<0.000000e+00> : vector<128xf32>
    %175 = vector.multi_reduction <add>, %173, %cst_82 [0] : vector<8x128xf32> to vector<128xf32>
    %176 = vector.shape_cast %175 : vector<128xf32> to vector<1x128xf32>
    %177 = arith.addf %174, %176 : vector<1x128xf32>
    %c6_83 = arith.constant 6 : index
    %c0_84 = arith.constant 0 : index
    %178 = vector.load %arg3[%c6_83, %c0_84] : memref<48x128xf32, #tpu.memory_space<vmem>>, vector<1x128xf32>
    tpu.vector_store %arg3[%c6_83, %c0_84], %177 {strides = array<i32>} : memref<48x128xf32, #tpu.memory_space<vmem>>, vector<1x128xf32>,
    %c21 = arith.constant 21 : index
    %c0_85 = arith.constant 0 : index
    %179 = vector.load %arg3[%c21, %c0_85] : memref<48x128xf32, #tpu.memory_space<vmem>>, vector<1x128xf32>
    %180 = arith.mulf %21, %173 : vector<8x128xf32>
    %cst_86 = arith.constant dense<0.000000e+00> : vector<128xf32>
    %181 = vector.multi_reduction <add>, %180, %cst_86 [0] : vector<8x128xf32> to vector<128xf32>
    %182 = vector.shape_cast %181 : vector<128xf32> to vector<1x128xf32>
    %183 = arith.addf %179, %182 : vector<1x128xf32>
    %c21_87 = arith.constant 21 : index
    %c0_88 = arith.constant 0 : index
    %184 = vector.load %arg3[%c21_87, %c0_88] : memref<48x128xf32, #tpu.memory_space<vmem>>, vector<1x128xf32>
    tpu.vector_store %arg3[%c21_87, %c0_88], %183 {strides = array<i32>} : memref<48x128xf32, #tpu.memory_space<vmem>>, vector<1x128xf32>,
    %c36 = arith.constant 36 : index
    %c0_89 = arith.constant 0 : index
    %185 = vector.load %arg3[%c36, %c0_89] : memref<48x128xf32, #tpu.memory_space<vmem>>, vector<1x128xf32>
    %186 = arith.mulf %65, %173 : vector<8x128xf32>
    %cst_90 = arith.constant dense<0.000000e+00> : vector<128xf32>
    %187 = vector.multi_reduction <add>, %186, %cst_90 [0] : vector<8x128xf32> to vector<128xf32>
    %188 = vector.shape_cast %187 : vector<128xf32> to vector<1x128xf32>
    %189 = arith.addf %185, %188 : vector<1x128xf32>
    %c36_91 = arith.constant 36 : index
    %c0_92 = arith.constant 0 : index
    %190 = vector.load %arg3[%c36_91, %c0_92] : memref<48x128xf32, #tpu.memory_space<vmem>>, vector<1x128xf32>
    tpu.vector_store %arg3[%c36_91, %c0_92], %189 {strides = array<i32>} : memref<48x128xf32, #tpu.memory_space<vmem>>, vector<1x128xf32>,
    %cst_93 = arith.constant 0.333333343 : f32
    %191 = vector.broadcast %cst_93 : f32 to vector<8x128xf32>
    %192 = arith.cmpf ogt, %21, %191 : vector<8x128xf32>
    %cst_94 = arith.constant 4.000000e-01 : f32
    %193 = vector.broadcast %cst_94 : f32 to vector<8x128xf32>
    %194 = arith.cmpf ole, %21, %193 : vector<8x128xf32>
    %195 = arith.andi %192, %194 : vector<8x128xi1>
    %196 = arith.andi %195, %14 : vector<8x128xi1>
    %197 = arith.extui %196 : vector<8x128xi1> to vector<8x128xi32>
    %198 = arith.sitofp %197 : vector<8x128xi32> to vector<8x128xf32>
    %c7 = arith.constant 7 : index
    %c0_95 = arith.constant 0 : index
    %199 = vector.load %arg3[%c7, %c0_95] : memref<48x128xf32, #tpu.memory_space<vmem>>, vector<1x128xf32>
    %cst_96 = arith.constant dense<0.000000e+00> : vector<128xf32>
    %200 = vector.multi_reduction <add>, %198, %cst_96 [0] : vector<8x128xf32> to vector<128xf32>
    %201 = vector.shape_cast %200 : vector<128xf32> to vector<1x128xf32>
    %202 = arith.addf %199, %201 : vector<1x128xf32>
    %c7_97 = arith.constant 7 : index
    %c0_98 = arith.constant 0 : index
    %203 = vector.load %arg3[%c7_97, %c0_98] : memref<48x128xf32, #tpu.memory_space<vmem>>, vector<1x128xf32>
    tpu.vector_store %arg3[%c7_97, %c0_98], %202 {strides = array<i32>} : memref<48x128xf32, #tpu.memory_space<vmem>>, vector<1x128xf32>,
    %c22 = arith.constant 22 : index
    %c0_99 = arith.constant 0 : index
    %204 = vector.load %arg3[%c22, %c0_99] : memref<48x128xf32, #tpu.memory_space<vmem>>, vector<1x128xf32>
    %205 = arith.mulf %21, %198 : vector<8x128xf32>
    %cst_100 = arith.constant dense<0.000000e+00> : vector<128xf32>
    %206 = vector.multi_reduction <add>, %205, %cst_100 [0] : vector<8x128xf32> to vector<128xf32>
    %207 = vector.shape_cast %206 : vector<128xf32> to vector<1x128xf32>
    %208 = arith.addf %204, %207 : vector<1x128xf32>
    %c22_101 = arith.constant 22 : index
    %c0_102 = arith.constant 0 : index
    %209 = vector.load %arg3[%c22_101, %c0_102] : memref<48x128xf32, #tpu.memory_space<vmem>>, vector<1x128xf32>
    tpu.vector_store %arg3[%c22_101, %c0_102], %208 {strides = array<i32>} : memref<48x128xf32, #tpu.memory_space<vmem>>, vector<1x128xf32>,
    %c37 = arith.constant 37 : index
    %c0_103 = arith.constant 0 : index
    %210 = vector.load %arg3[%c37, %c0_103] : memref<48x128xf32, #tpu.memory_space<vmem>>, vector<1x128xf32>
    %211 = arith.mulf %65, %198 : vector<8x128xf32>
    %cst_104 = arith.constant dense<0.000000e+00> : vector<128xf32>
    %212 = vector.multi_reduction <add>, %211, %cst_104 [0] : vector<8x128xf32> to vector<128xf32>
    %213 = vector.shape_cast %212 : vector<128xf32> to vector<1x128xf32>
    %214 = arith.addf %210, %213 : vector<1x128xf32>
    %c37_105 = arith.constant 37 : index
    %c0_106 = arith.constant 0 : index
    %215 = vector.load %arg3[%c37_105, %c0_106] : memref<48x128xf32, #tpu.memory_space<vmem>>, vector<1x128xf32>
    tpu.vector_store %arg3[%c37_105, %c0_106], %214 {strides = array<i32>} : memref<48x128xf32, #tpu.memory_space<vmem>>, vector<1x128xf32>,
    %cst_107 = arith.constant 4.000000e-01 : f32
    %216 = vector.broadcast %cst_107 : f32 to vector<8x128xf32>
    %217 = arith.cmpf ogt, %21, %216 : vector<8x128xf32>
    %cst_108 = arith.constant 0.466666669 : f32
    %218 = vector.broadcast %cst_108 : f32 to vector<8x128xf32>
    %219 = arith.cmpf ole, %21, %218 : vector<8x128xf32>
    %220 = arith.andi %217, %219 : vector<8x128xi1>
    %221 = arith.andi %220, %14 : vector<8x128xi1>
    %222 = arith.extui %221 : vector<8x128xi1> to vector<8x128xi32>
    %223 = arith.sitofp %222 : vector<8x128xi32> to vector<8x128xf32>
    %c8 = arith.constant 8 : index
    %c0_109 = arith.constant 0 : index
    %224 = vector.load %arg3[%c8, %c0_109] : memref<48x128xf32, #tpu.memory_space<vmem>>, vector<1x128xf32>
    %cst_110 = arith.constant dense<0.000000e+00> : vector<128xf32>
    %225 = vector.multi_reduction <add>, %223, %cst_110 [0] : vector<8x128xf32> to vector<128xf32>
    %226 = vector.shape_cast %225 : vector<128xf32> to vector<1x128xf32>
    %227 = arith.addf %224, %226 : vector<1x128xf32>
    %c8_111 = arith.constant 8 : index
    %c0_112 = arith.constant 0 : index
    %228 = vector.load %arg3[%c8_111, %c0_112] : memref<48x128xf32, #tpu.memory_space<vmem>>, vector<1x128xf32>
    tpu.vector_store %arg3[%c8_111, %c0_112], %227 {strides = array<i32>} : memref<48x128xf32, #tpu.memory_space<vmem>>, vector<1x128xf32>,
    %c23 = arith.constant 23 : index
    %c0_113 = arith.constant 0 : index
    %229 = vector.load %arg3[%c23, %c0_113] : memref<48x128xf32, #tpu.memory_space<vmem>>, vector<1x128xf32>
    %230 = arith.mulf %21, %223 : vector<8x128xf32>
    %cst_114 = arith.constant dense<0.000000e+00> : vector<128xf32>
    %231 = vector.multi_reduction <add>, %230, %cst_114 [0] : vector<8x128xf32> to vector<128xf32>
    %232 = vector.shape_cast %231 : vector<128xf32> to vector<1x128xf32>
    %233 = arith.addf %229, %232 : vector<1x128xf32>
    %c23_115 = arith.constant 23 : index
    %c0_116 = arith.constant 0 : index
    %234 = vector.load %arg3[%c23_115, %c0_116] : memref<48x128xf32, #tpu.memory_space<vmem>>, vector<1x128xf32>
    tpu.vector_store %arg3[%c23_115, %c0_116], %233 {strides = array<i32>} : memref<48x128xf32, #tpu.memory_space<vmem>>, vector<1x128xf32>,
    %c38 = arith.constant 38 : index
    %c0_117 = arith.constant 0 : index
    %235 = vector.load %arg3[%c38, %c0_117] : memref<48x128xf32, #tpu.memory_space<vmem>>, vector<1x128xf32>
    %236 = arith.mulf %65, %223 : vector<8x128xf32>
    %cst_118 = arith.constant dense<0.000000e+00> : vector<128xf32>
    %237 = vector.multi_reduction <add>, %236, %cst_118 [0] : vector<8x128xf32> to vector<128xf32>
    %238 = vector.shape_cast %237 : vector<128xf32> to vector<1x128xf32>
    %239 = arith.addf %235, %238 : vector<1x128xf32>
    %c38_119 = arith.constant 38 : index
    %c0_120 = arith.constant 0 : index
    %240 = vector.load %arg3[%c38_119, %c0_120] : memref<48x128xf32, #tpu.memory_space<vmem>>, vector<1x128xf32>
    tpu.vector_store %arg3[%c38_119, %c0_120], %239 {strides = array<i32>} : memref<48x128xf32, #tpu.memory_space<vmem>>, vector<1x128xf32>,
    %cst_121 = arith.constant 0.466666669 : f32
    %241 = vector.broadcast %cst_121 : f32 to vector<8x128xf32>
    %242 = arith.cmpf ogt, %21, %241 : vector<8x128xf32>
    %cst_122 = arith.constant 0.533333361 : f32
    %243 = vector.broadcast %cst_122 : f32 to vector<8x128xf32>
    %244 = arith.cmpf ole, %21, %243 : vector<8x128xf32>
    %245 = arith.andi %242, %244 : vector<8x128xi1>
    %246 = arith.andi %245, %14 : vector<8x128xi1>
    %247 = arith.extui %246 : vector<8x128xi1> to vector<8x128xi32>
    %248 = arith.sitofp %247 : vector<8x128xi32> to vector<8x128xf32>
    %c9 = arith.constant 9 : index
    %c0_123 = arith.constant 0 : index
    %249 = vector.load %arg3[%c9, %c0_123] : memref<48x128xf32, #tpu.memory_space<vmem>>, vector<1x128xf32>
    %cst_124 = arith.constant dense<0.000000e+00> : vector<128xf32>
    %250 = vector.multi_reduction <add>, %248, %cst_124 [0] : vector<8x128xf32> to vector<128xf32>
    %251 = vector.shape_cast %250 : vector<128xf32> to vector<1x128xf32>
    %252 = arith.addf %249, %251 : vector<1x128xf32>
    %c9_125 = arith.constant 9 : index
    %c0_126 = arith.constant 0 : index
    %253 = vector.load %arg3[%c9_125, %c0_126] : memref<48x128xf32, #tpu.memory_space<vmem>>, vector<1x128xf32>
    tpu.vector_store %arg3[%c9_125, %c0_126], %252 {strides = array<i32>} : memref<48x128xf32, #tpu.memory_space<vmem>>, vector<1x128xf32>,
    %c24 = arith.constant 24 : index
    %c0_127 = arith.constant 0 : index
    %254 = vector.load %arg3[%c24, %c0_127] : memref<48x128xf32, #tpu.memory_space<vmem>>, vector<1x128xf32>
    %255 = arith.mulf %21, %248 : vector<8x128xf32>
    %cst_128 = arith.constant dense<0.000000e+00> : vector<128xf32>
    %256 = vector.multi_reduction <add>, %255, %cst_128 [0] : vector<8x128xf32> to vector<128xf32>
    %257 = vector.shape_cast %256 : vector<128xf32> to vector<1x128xf32>
    %258 = arith.addf %254, %257 : vector<1x128xf32>
    %c24_129 = arith.constant 24 : index
    %c0_130 = arith.constant 0 : index
    %259 = vector.load %arg3[%c24_129, %c0_130] : memref<48x128xf32, #tpu.memory_space<vmem>>, vector<1x128xf32>
    tpu.vector_store %arg3[%c24_129, %c0_130], %258 {strides = array<i32>} : memref<48x128xf32, #tpu.memory_space<vmem>>, vector<1x128xf32>,
    %c39 = arith.constant 39 : index
    %c0_131 = arith.constant 0 : index
    %260 = vector.load %arg3[%c39, %c0_131] : memref<48x128xf32, #tpu.memory_space<vmem>>, vector<1x128xf32>
    %261 = arith.mulf %65, %248 : vector<8x128xf32>
    %cst_132 = arith.constant dense<0.000000e+00> : vector<128xf32>
    %262 = vector.multi_reduction <add>, %261, %cst_132 [0] : vector<8x128xf32> to vector<128xf32>
    %263 = vector.shape_cast %262 : vector<128xf32> to vector<1x128xf32>
    %264 = arith.addf %260, %263 : vector<1x128xf32>
    %c39_133 = arith.constant 39 : index
    %c0_134 = arith.constant 0 : index
    %265 = vector.load %arg3[%c39_133, %c0_134] : memref<48x128xf32, #tpu.memory_space<vmem>>, vector<1x128xf32>
    tpu.vector_store %arg3[%c39_133, %c0_134], %264 {strides = array<i32>} : memref<48x128xf32, #tpu.memory_space<vmem>>, vector<1x128xf32>,
    %cst_135 = arith.constant 0.533333361 : f32
    %266 = vector.broadcast %cst_135 : f32 to vector<8x128xf32>
    %267 = arith.cmpf ogt, %21, %266 : vector<8x128xf32>
    %cst_136 = arith.constant 6.000000e-01 : f32
    %268 = vector.broadcast %cst_136 : f32 to vector<8x128xf32>
    %269 = arith.cmpf ole, %21, %268 : vector<8x128xf32>
    %270 = arith.andi %267, %269 : vector<8x128xi1>
    %271 = arith.andi %270, %14 : vector<8x128xi1>
    %272 = arith.extui %271 : vector<8x128xi1> to vector<8x128xi32>
    %273 = arith.sitofp %272 : vector<8x128xi32> to vector<8x128xf32>
    %c10 = arith.constant 10 : index
    %c0_137 = arith.constant 0 : index
    %274 = vector.load %arg3[%c10, %c0_137] : memref<48x128xf32, #tpu.memory_space<vmem>>, vector<1x128xf32>
    %cst_138 = arith.constant dense<0.000000e+00> : vector<128xf32>
    %275 = vector.multi_reduction <add>, %273, %cst_138 [0] : vector<8x128xf32> to vector<128xf32>
    %276 = vector.shape_cast %275 : vector<128xf32> to vector<1x128xf32>
    %277 = arith.addf %274, %276 : vector<1x128xf32>
    %c10_139 = arith.constant 10 : index
    %c0_140 = arith.constant 0 : index
    %278 = vector.load %arg3[%c10_139, %c0_140] : memref<48x128xf32, #tpu.memory_space<vmem>>, vector<1x128xf32>
    tpu.vector_store %arg3[%c10_139, %c0_140], %277 {strides = array<i32>} : memref<48x128xf32, #tpu.memory_space<vmem>>, vector<1x128xf32>,
    %c25 = arith.constant 25 : index
    %c0_141 = arith.constant 0 : index
    %279 = vector.load %arg3[%c25, %c0_141] : memref<48x128xf32, #tpu.memory_space<vmem>>, vector<1x128xf32>
    %280 = arith.mulf %21, %273 : vector<8x128xf32>
    %cst_142 = arith.constant dense<0.000000e+00> : vector<128xf32>
    %281 = vector.multi_reduction <add>, %280, %cst_142 [0] : vector<8x128xf32> to vector<128xf32>
    %282 = vector.shape_cast %281 : vector<128xf32> to vector<1x128xf32>
    %283 = arith.addf %279, %282 : vector<1x128xf32>
    %c25_143 = arith.constant 25 : index
    %c0_144 = arith.constant 0 : index
    %284 = vector.load %arg3[%c25_143, %c0_144] : memref<48x128xf32, #tpu.memory_space<vmem>>, vector<1x128xf32>
    tpu.vector_store %arg3[%c25_143, %c0_144], %283 {strides = array<i32>} : memref<48x128xf32, #tpu.memory_space<vmem>>, vector<1x128xf32>,
    %c40 = arith.constant 40 : index
    %c0_145 = arith.constant 0 : index
    %285 = vector.load %arg3[%c40, %c0_145] : memref<48x128xf32, #tpu.memory_space<vmem>>, vector<1x128xf32>
    %286 = arith.mulf %65, %273 : vector<8x128xf32>
    %cst_146 = arith.constant dense<0.000000e+00> : vector<128xf32>
    %287 = vector.multi_reduction <add>, %286, %cst_146 [0] : vector<8x128xf32> to vector<128xf32>
    %288 = vector.shape_cast %287 : vector<128xf32> to vector<1x128xf32>
    %289 = arith.addf %285, %288 : vector<1x128xf32>
    %c40_147 = arith.constant 40 : index
    %c0_148 = arith.constant 0 : index
    %290 = vector.load %arg3[%c40_147, %c0_148] : memref<48x128xf32, #tpu.memory_space<vmem>>, vector<1x128xf32>
    tpu.vector_store %arg3[%c40_147, %c0_148], %289 {strides = array<i32>} : memref<48x128xf32, #tpu.memory_space<vmem>>, vector<1x128xf32>,
    %cst_149 = arith.constant 6.000000e-01 : f32
    %291 = vector.broadcast %cst_149 : f32 to vector<8x128xf32>
    %292 = arith.cmpf ogt, %21, %291 : vector<8x128xf32>
    %cst_150 = arith.constant 0.666666686 : f32
    %293 = vector.broadcast %cst_150 : f32 to vector<8x128xf32>
    %294 = arith.cmpf ole, %21, %293 : vector<8x128xf32>
    %295 = arith.andi %292, %294 : vector<8x128xi1>
    %296 = arith.andi %295, %14 : vector<8x128xi1>
    %297 = arith.extui %296 : vector<8x128xi1> to vector<8x128xi32>
    %298 = arith.sitofp %297 : vector<8x128xi32> to vector<8x128xf32>
    %c11 = arith.constant 11 : index
    %c0_151 = arith.constant 0 : index
    %299 = vector.load %arg3[%c11, %c0_151] : memref<48x128xf32, #tpu.memory_space<vmem>>, vector<1x128xf32>
    %cst_152 = arith.constant dense<0.000000e+00> : vector<128xf32>
    %300 = vector.multi_reduction <add>, %298, %cst_152 [0] : vector<8x128xf32> to vector<128xf32>
    %301 = vector.shape_cast %300 : vector<128xf32> to vector<1x128xf32>
    %302 = arith.addf %299, %301 : vector<1x128xf32>
    %c11_153 = arith.constant 11 : index
    %c0_154 = arith.constant 0 : index
    %303 = vector.load %arg3[%c11_153, %c0_154] : memref<48x128xf32, #tpu.memory_space<vmem>>, vector<1x128xf32>
    tpu.vector_store %arg3[%c11_153, %c0_154], %302 {strides = array<i32>} : memref<48x128xf32, #tpu.memory_space<vmem>>, vector<1x128xf32>,
    %c26 = arith.constant 26 : index
    %c0_155 = arith.constant 0 : index
    %304 = vector.load %arg3[%c26, %c0_155] : memref<48x128xf32, #tpu.memory_space<vmem>>, vector<1x128xf32>
    %305 = arith.mulf %21, %298 : vector<8x128xf32>
    %cst_156 = arith.constant dense<0.000000e+00> : vector<128xf32>
    %306 = vector.multi_reduction <add>, %305, %cst_156 [0] : vector<8x128xf32> to vector<128xf32>
    %307 = vector.shape_cast %306 : vector<128xf32> to vector<1x128xf32>
    %308 = arith.addf %304, %307 : vector<1x128xf32>
    %c26_157 = arith.constant 26 : index
    %c0_158 = arith.constant 0 : index
    %309 = vector.load %arg3[%c26_157, %c0_158] : memref<48x128xf32, #tpu.memory_space<vmem>>, vector<1x128xf32>
    tpu.vector_store %arg3[%c26_157, %c0_158], %308 {strides = array<i32>} : memref<48x128xf32, #tpu.memory_space<vmem>>, vector<1x128xf32>,
    %c41 = arith.constant 41 : index
    %c0_159 = arith.constant 0 : index
    %310 = vector.load %arg3[%c41, %c0_159] : memref<48x128xf32, #tpu.memory_space<vmem>>, vector<1x128xf32>
    %311 = arith.mulf %65, %298 : vector<8x128xf32>
    %cst_160 = arith.constant dense<0.000000e+00> : vector<128xf32>
    %312 = vector.multi_reduction <add>, %311, %cst_160 [0] : vector<8x128xf32> to vector<128xf32>
    %313 = vector.shape_cast %312 : vector<128xf32> to vector<1x128xf32>
    %314 = arith.addf %310, %313 : vector<1x128xf32>
    %c41_161 = arith.constant 41 : index
    %c0_162 = arith.constant 0 : index
    %315 = vector.load %arg3[%c41_161, %c0_162] : memref<48x128xf32, #tpu.memory_space<vmem>>, vector<1x128xf32>
    tpu.vector_store %arg3[%c41_161, %c0_162], %314 {strides = array<i32>} : memref<48x128xf32, #tpu.memory_space<vmem>>, vector<1x128xf32>,
    %cst_163 = arith.constant 0.666666686 : f32
    %316 = vector.broadcast %cst_163 : f32 to vector<8x128xf32>
    %317 = arith.cmpf ogt, %21, %316 : vector<8x128xf32>
    %cst_164 = arith.constant 0.733333349 : f32
    %318 = vector.broadcast %cst_164 : f32 to vector<8x128xf32>
    %319 = arith.cmpf ole, %21, %318 : vector<8x128xf32>
    %320 = arith.andi %317, %319 : vector<8x128xi1>
    %321 = arith.andi %320, %14 : vector<8x128xi1>
    %322 = arith.extui %321 : vector<8x128xi1> to vector<8x128xi32>
    %323 = arith.sitofp %322 : vector<8x128xi32> to vector<8x128xf32>
    %c12 = arith.constant 12 : index
    %c0_165 = arith.constant 0 : index
    %324 = vector.load %arg3[%c12, %c0_165] : memref<48x128xf32, #tpu.memory_space<vmem>>, vector<1x128xf32>
    %cst_166 = arith.constant dense<0.000000e+00> : vector<128xf32>
    %325 = vector.multi_reduction <add>, %323, %cst_166 [0] : vector<8x128xf32> to vector<128xf32>
    %326 = vector.shape_cast %325 : vector<128xf32> to vector<1x128xf32>
    %327 = arith.addf %324, %326 : vector<1x128xf32>
    %c12_167 = arith.constant 12 : index
    %c0_168 = arith.constant 0 : index
    %328 = vector.load %arg3[%c12_167, %c0_168] : memref<48x128xf32, #tpu.memory_space<vmem>>, vector<1x128xf32>
    tpu.vector_store %arg3[%c12_167, %c0_168], %327 {strides = array<i32>} : memref<48x128xf32, #tpu.memory_space<vmem>>, vector<1x128xf32>,
    %c27 = arith.constant 27 : index
    %c0_169 = arith.constant 0 : index
    %329 = vector.load %arg3[%c27, %c0_169] : memref<48x128xf32, #tpu.memory_space<vmem>>, vector<1x128xf32>
    %330 = arith.mulf %21, %323 : vector<8x128xf32>
    %cst_170 = arith.constant dense<0.000000e+00> : vector<128xf32>
    %331 = vector.multi_reduction <add>, %330, %cst_170 [0] : vector<8x128xf32> to vector<128xf32>
    %332 = vector.shape_cast %331 : vector<128xf32> to vector<1x128xf32>
    %333 = arith.addf %329, %332 : vector<1x128xf32>
    %c27_171 = arith.constant 27 : index
    %c0_172 = arith.constant 0 : index
    %334 = vector.load %arg3[%c27_171, %c0_172] : memref<48x128xf32, #tpu.memory_space<vmem>>, vector<1x128xf32>
    tpu.vector_store %arg3[%c27_171, %c0_172], %333 {strides = array<i32>} : memref<48x128xf32, #tpu.memory_space<vmem>>, vector<1x128xf32>,
    %c42 = arith.constant 42 : index
    %c0_173 = arith.constant 0 : index
    %335 = vector.load %arg3[%c42, %c0_173] : memref<48x128xf32, #tpu.memory_space<vmem>>, vector<1x128xf32>
    %336 = arith.mulf %65, %323 : vector<8x128xf32>
    %cst_174 = arith.constant dense<0.000000e+00> : vector<128xf32>
    %337 = vector.multi_reduction <add>, %336, %cst_174 [0] : vector<8x128xf32> to vector<128xf32>
    %338 = vector.shape_cast %337 : vector<128xf32> to vector<1x128xf32>
    %339 = arith.addf %335, %338 : vector<1x128xf32>
    %c42_175 = arith.constant 42 : index
    %c0_176 = arith.constant 0 : index
    %340 = vector.load %arg3[%c42_175, %c0_176] : memref<48x128xf32, #tpu.memory_space<vmem>>, vector<1x128xf32>
    tpu.vector_store %arg3[%c42_175, %c0_176], %339 {strides = array<i32>} : memref<48x128xf32, #tpu.memory_space<vmem>>, vector<1x128xf32>,
    %cst_177 = arith.constant 0.733333349 : f32
    %341 = vector.broadcast %cst_177 : f32 to vector<8x128xf32>
    %342 = arith.cmpf ogt, %21, %341 : vector<8x128xf32>
    %cst_178 = arith.constant 8.000000e-01 : f32
    %343 = vector.broadcast %cst_178 : f32 to vector<8x128xf32>
    %344 = arith.cmpf ole, %21, %343 : vector<8x128xf32>
    %345 = arith.andi %342, %344 : vector<8x128xi1>
    %346 = arith.andi %345, %14 : vector<8x128xi1>
    %347 = arith.extui %346 : vector<8x128xi1> to vector<8x128xi32>
    %348 = arith.sitofp %347 : vector<8x128xi32> to vector<8x128xf32>
    %c13 = arith.constant 13 : index
    %c0_179 = arith.constant 0 : index
    %349 = vector.load %arg3[%c13, %c0_179] : memref<48x128xf32, #tpu.memory_space<vmem>>, vector<1x128xf32>
    %cst_180 = arith.constant dense<0.000000e+00> : vector<128xf32>
    %350 = vector.multi_reduction <add>, %348, %cst_180 [0] : vector<8x128xf32> to vector<128xf32>
    %351 = vector.shape_cast %350 : vector<128xf32> to vector<1x128xf32>
    %352 = arith.addf %349, %351 : vector<1x128xf32>
    %c13_181 = arith.constant 13 : index
    %c0_182 = arith.constant 0 : index
    %353 = vector.load %arg3[%c13_181, %c0_182] : memref<48x128xf32, #tpu.memory_space<vmem>>, vector<1x128xf32>
    tpu.vector_store %arg3[%c13_181, %c0_182], %352 {strides = array<i32>} : memref<48x128xf32, #tpu.memory_space<vmem>>, vector<1x128xf32>,
    %c28 = arith.constant 28 : index
    %c0_183 = arith.constant 0 : index
    %354 = vector.load %arg3[%c28, %c0_183] : memref<48x128xf32, #tpu.memory_space<vmem>>, vector<1x128xf32>
    %355 = arith.mulf %21, %348 : vector<8x128xf32>
    %cst_184 = arith.constant dense<0.000000e+00> : vector<128xf32>
    %356 = vector.multi_reduction <add>, %355, %cst_184 [0] : vector<8x128xf32> to vector<128xf32>
    %357 = vector.shape_cast %356 : vector<128xf32> to vector<1x128xf32>
    %358 = arith.addf %354, %357 : vector<1x128xf32>
    %c28_185 = arith.constant 28 : index
    %c0_186 = arith.constant 0 : index
    %359 = vector.load %arg3[%c28_185, %c0_186] : memref<48x128xf32, #tpu.memory_space<vmem>>, vector<1x128xf32>
    tpu.vector_store %arg3[%c28_185, %c0_186], %358 {strides = array<i32>} : memref<48x128xf32, #tpu.memory_space<vmem>>, vector<1x128xf32>,
    %c43 = arith.constant 43 : index
    %c0_187 = arith.constant 0 : index
    %360 = vector.load %arg3[%c43, %c0_187] : memref<48x128xf32, #tpu.memory_space<vmem>>, vector<1x128xf32>
    %361 = arith.mulf %65, %348 : vector<8x128xf32>
    %cst_188 = arith.constant dense<0.000000e+00> : vector<128xf32>
    %362 = vector.multi_reduction <add>, %361, %cst_188 [0] : vector<8x128xf32> to vector<128xf32>
    %363 = vector.shape_cast %362 : vector<128xf32> to vector<1x128xf32>
    %364 = arith.addf %360, %363 : vector<1x128xf32>
    %c43_189 = arith.constant 43 : index
    %c0_190 = arith.constant 0 : index
    %365 = vector.load %arg3[%c43_189, %c0_190] : memref<48x128xf32, #tpu.memory_space<vmem>>, vector<1x128xf32>
    tpu.vector_store %arg3[%c43_189, %c0_190], %364 {strides = array<i32>} : memref<48x128xf32, #tpu.memory_space<vmem>>, vector<1x128xf32>,
    %cst_191 = arith.constant 8.000000e-01 : f32
    %366 = vector.broadcast %cst_191 : f32 to vector<8x128xf32>
    %367 = arith.cmpf ogt, %21, %366 : vector<8x128xf32>
    %cst_192 = arith.constant 0.866666674 : f32
    %368 = vector.broadcast %cst_192 : f32 to vector<8x128xf32>
    %369 = arith.cmpf ole, %21, %368 : vector<8x128xf32>
    %370 = arith.andi %367, %369 : vector<8x128xi1>
    %371 = arith.andi %370, %14 : vector<8x128xi1>
    %372 = arith.extui %371 : vector<8x128xi1> to vector<8x128xi32>
    %373 = arith.sitofp %372 : vector<8x128xi32> to vector<8x128xf32>
    %c14 = arith.constant 14 : index
    %c0_193 = arith.constant 0 : index
    %374 = vector.load %arg3[%c14, %c0_193] : memref<48x128xf32, #tpu.memory_space<vmem>>, vector<1x128xf32>
    %cst_194 = arith.constant dense<0.000000e+00> : vector<128xf32>
    %375 = vector.multi_reduction <add>, %373, %cst_194 [0] : vector<8x128xf32> to vector<128xf32>
    %376 = vector.shape_cast %375 : vector<128xf32> to vector<1x128xf32>
    %377 = arith.addf %374, %376 : vector<1x128xf32>
    %c14_195 = arith.constant 14 : index
    %c0_196 = arith.constant 0 : index
    %378 = vector.load %arg3[%c14_195, %c0_196] : memref<48x128xf32, #tpu.memory_space<vmem>>, vector<1x128xf32>
    tpu.vector_store %arg3[%c14_195, %c0_196], %377 {strides = array<i32>} : memref<48x128xf32, #tpu.memory_space<vmem>>, vector<1x128xf32>,
    %c29 = arith.constant 29 : index
    %c0_197 = arith.constant 0 : index
    %379 = vector.load %arg3[%c29, %c0_197] : memref<48x128xf32, #tpu.memory_space<vmem>>, vector<1x128xf32>
    %380 = arith.mulf %21, %373 : vector<8x128xf32>
    %cst_198 = arith.constant dense<0.000000e+00> : vector<128xf32>
    %381 = vector.multi_reduction <add>, %380, %cst_198 [0] : vector<8x128xf32> to vector<128xf32>
    %382 = vector.shape_cast %381 : vector<128xf32> to vector<1x128xf32>
    %383 = arith.addf %379, %382 : vector<1x128xf32>
    %c29_199 = arith.constant 29 : index
    %c0_200 = arith.constant 0 : index
    %384 = vector.load %arg3[%c29_199, %c0_200] : memref<48x128xf32, #tpu.memory_space<vmem>>, vector<1x128xf32>
    tpu.vector_store %arg3[%c29_199, %c0_200], %383 {strides = array<i32>} : memref<48x128xf32, #tpu.memory_space<vmem>>, vector<1x128xf32>,
    %c44 = arith.constant 44 : index
    %c0_201 = arith.constant 0 : index
    %385 = vector.load %arg3[%c44, %c0_201] : memref<48x128xf32, #tpu.memory_space<vmem>>, vector<1x128xf32>
    %386 = arith.mulf %65, %373 : vector<8x128xf32>
    %cst_202 = arith.constant dense<0.000000e+00> : vector<128xf32>
    %387 = vector.multi_reduction <add>, %386, %cst_202 [0] : vector<8x128xf32> to vector<128xf32>
    %388 = vector.shape_cast %387 : vector<128xf32> to vector<1x128xf32>
    %389 = arith.addf %385, %388 : vector<1x128xf32>
    %c44_203 = arith.constant 44 : index
    %c0_204 = arith.constant 0 : index
    %390 = vector.load %arg3[%c44_203, %c0_204] : memref<48x128xf32, #tpu.memory_space<vmem>>, vector<1x128xf32>
    tpu.vector_store %arg3[%c44_203, %c0_204], %389 {strides = array<i32>} : memref<48x128xf32, #tpu.memory_space<vmem>>, vector<1x128xf32>,
    %cst_205 = arith.constant 0.866666674 : f32
    %391 = vector.broadcast %cst_205 : f32 to vector<8x128xf32>
    %392 = arith.cmpf ogt, %21, %391 : vector<8x128xf32>
    %cst_206 = arith.constant 0.933333337 : f32
    %393 = vector.broadcast %cst_206 : f32 to vector<8x128xf32>
    %394 = arith.cmpf ole, %21, %393 : vector<8x128xf32>
    %395 = arith.andi %392, %394 : vector<8x128xi1>
    %396 = arith.andi %395, %14 : vector<8x128xi1>
    %397 = arith.extui %396 : vector<8x128xi1> to vector<8x128xi32>
    %398 = arith.sitofp %397 : vector<8x128xi32> to vector<8x128xf32>
    %c15 = arith.constant 15 : index
    %c0_207 = arith.constant 0 : index
    %399 = vector.load %arg3[%c15, %c0_207] : memref<48x128xf32, #tpu.memory_space<vmem>>, vector<1x128xf32>
    %cst_208 = arith.constant dense<0.000000e+00> : vector<128xf32>
    %400 = vector.multi_reduction <add>, %398, %cst_208 [0] : vector<8x128xf32> to vector<128xf32>
    %401 = vector.shape_cast %400 : vector<128xf32> to vector<1x128xf32>
    %402 = arith.addf %399, %401 : vector<1x128xf32>
    %c15_209 = arith.constant 15 : index
    %c0_210 = arith.constant 0 : index
    %403 = vector.load %arg3[%c15_209, %c0_210] : memref<48x128xf32, #tpu.memory_space<vmem>>, vector<1x128xf32>
    tpu.vector_store %arg3[%c15_209, %c0_210], %402 {strides = array<i32>} : memref<48x128xf32, #tpu.memory_space<vmem>>, vector<1x128xf32>,
    %c30 = arith.constant 30 : index
    %c0_211 = arith.constant 0 : index
    %404 = vector.load %arg3[%c30, %c0_211] : memref<48x128xf32, #tpu.memory_space<vmem>>, vector<1x128xf32>
    %405 = arith.mulf %21, %398 : vector<8x128xf32>
    %cst_212 = arith.constant dense<0.000000e+00> : vector<128xf32>
    %406 = vector.multi_reduction <add>, %405, %cst_212 [0] : vector<8x128xf32> to vector<128xf32>
    %407 = vector.shape_cast %406 : vector<128xf32> to vector<1x128xf32>
    %408 = arith.addf %404, %407 : vector<1x128xf32>
    %c30_213 = arith.constant 30 : index
    %c0_214 = arith.constant 0 : index
    %409 = vector.load %arg3[%c30_213, %c0_214] : memref<48x128xf32, #tpu.memory_space<vmem>>, vector<1x128xf32>
    tpu.vector_store %arg3[%c30_213, %c0_214], %408 {strides = array<i32>} : memref<48x128xf32, #tpu.memory_space<vmem>>, vector<1x128xf32>,
    %c45 = arith.constant 45 : index
    %c0_215 = arith.constant 0 : index
    %410 = vector.load %arg3[%c45, %c0_215] : memref<48x128xf32, #tpu.memory_space<vmem>>, vector<1x128xf32>
    %411 = arith.mulf %65, %398 : vector<8x128xf32>
    %cst_216 = arith.constant dense<0.000000e+00> : vector<128xf32>
    %412 = vector.multi_reduction <add>, %411, %cst_216 [0] : vector<8x128xf32> to vector<128xf32>
    %413 = vector.shape_cast %412 : vector<128xf32> to vector<1x128xf32>
    %414 = arith.addf %410, %413 : vector<1x128xf32>
    %c45_217 = arith.constant 45 : index
    %c0_218 = arith.constant 0 : index
    %415 = vector.load %arg3[%c45_217, %c0_218] : memref<48x128xf32, #tpu.memory_space<vmem>>, vector<1x128xf32>
    tpu.vector_store %arg3[%c45_217, %c0_218], %414 {strides = array<i32>} : memref<48x128xf32, #tpu.memory_space<vmem>>, vector<1x128xf32>,
    %cst_219 = arith.constant 0.933333337 : f32
    %416 = vector.broadcast %cst_219 : f32 to vector<8x128xf32>
    %417 = arith.cmpf ogt, %21, %416 : vector<8x128xf32>
    %cst_220 = arith.constant 1.000000e+00 : f32
    %418 = vector.broadcast %cst_220 : f32 to vector<8x128xf32>
    %419 = arith.cmpf ole, %21, %418 : vector<8x128xf32>
    %420 = arith.andi %417, %419 : vector<8x128xi1>
    %421 = arith.andi %420, %14 : vector<8x128xi1>
    %422 = arith.extui %421 : vector<8x128xi1> to vector<8x128xi32>
    %423 = arith.sitofp %422 : vector<8x128xi32> to vector<8x128xf32>
    %c16 = arith.constant 16 : index
    %c0_221 = arith.constant 0 : index
    %424 = vector.load %arg3[%c16, %c0_221] : memref<48x128xf32, #tpu.memory_space<vmem>>, vector<1x128xf32>
    %cst_222 = arith.constant dense<0.000000e+00> : vector<128xf32>
    %425 = vector.multi_reduction <add>, %423, %cst_222 [0] : vector<8x128xf32> to vector<128xf32>
    %426 = vector.shape_cast %425 : vector<128xf32> to vector<1x128xf32>
    %427 = arith.addf %424, %426 : vector<1x128xf32>
    %c16_223 = arith.constant 16 : index
    %c0_224 = arith.constant 0 : index
    %428 = vector.load %arg3[%c16_223, %c0_224] : memref<48x128xf32, #tpu.memory_space<vmem>>, vector<1x128xf32>
    tpu.vector_store %arg3[%c16_223, %c0_224], %427 {strides = array<i32>} : memref<48x128xf32, #tpu.memory_space<vmem>>, vector<1x128xf32>,
    %c31 = arith.constant 31 : index
    %c0_225 = arith.constant 0 : index
    %429 = vector.load %arg3[%c31, %c0_225] : memref<48x128xf32, #tpu.memory_space<vmem>>, vector<1x128xf32>
    %430 = arith.mulf %21, %423 : vector<8x128xf32>
    %cst_226 = arith.constant dense<0.000000e+00> : vector<128xf32>
    %431 = vector.multi_reduction <add>, %430, %cst_226 [0] : vector<8x128xf32> to vector<128xf32>
    %432 = vector.shape_cast %431 : vector<128xf32> to vector<1x128xf32>
    %433 = arith.addf %429, %432 : vector<1x128xf32>
    %c31_227 = arith.constant 31 : index
    %c0_228 = arith.constant 0 : index
    %434 = vector.load %arg3[%c31_227, %c0_228] : memref<48x128xf32, #tpu.memory_space<vmem>>, vector<1x128xf32>
    tpu.vector_store %arg3[%c31_227, %c0_228], %433 {strides = array<i32>} : memref<48x128xf32, #tpu.memory_space<vmem>>, vector<1x128xf32>,
    %c46 = arith.constant 46 : index
    %c0_229 = arith.constant 0 : index
    %435 = vector.load %arg3[%c46, %c0_229] : memref<48x128xf32, #tpu.memory_space<vmem>>, vector<1x128xf32>
    %436 = arith.mulf %65, %423 : vector<8x128xf32>
    %cst_230 = arith.constant dense<0.000000e+00> : vector<128xf32>
    %437 = vector.multi_reduction <add>, %436, %cst_230 [0] : vector<8x128xf32> to vector<128xf32>
    %438 = vector.shape_cast %437 : vector<128xf32> to vector<1x128xf32>
    %439 = arith.addf %435, %438 : vector<1x128xf32>
    %c46_231 = arith.constant 46 : index
    %c0_232 = arith.constant 0 : index
    %440 = vector.load %arg3[%c46_231, %c0_232] : memref<48x128xf32, #tpu.memory_space<vmem>>, vector<1x128xf32>
    tpu.vector_store %arg3[%c46_231, %c0_232], %439 {strides = array<i32>} : memref<48x128xf32, #tpu.memory_space<vmem>>, vector<1x128xf32>,
    return
  }
  func.func @transform_0(%arg0: i32) -> (i32, i32) {
    %c0_i32 = arith.constant 0 : i32
    %c0_i32_0 = arith.constant 0 : i32
    return %arg0, %c0_i32 : i32, i32
  }
  func.func @transform_1(%arg0: i32) -> (i32, i32) {
    %c0_i32 = arith.constant 0 : i32
    %c0_i32_0 = arith.constant 0 : i32
    return %arg0, %c0_i32 : i32, i32
  }
  func.func @transform_2(%arg0: i32) -> (i32, i32) {
    %c0_i32 = arith.constant 0 : i32
    %c0_i32_0 = arith.constant 0 : i32
    %c0_i32_1 = arith.constant 0 : i32
    return %c0_i32, %c0_i32_0 : i32, i32
  }
}

</mosaic_0001>

<bundles_post_ra>
// kernel: tpu_custom_call.1
= control target key start
LH: loop header
LB: loop body
LE: loop exit
PB: predicated region body
PF: predicated region fallthrough
CT: control target
= control target key end

     0   :  { %7 = vsyncpa [#allocation3], 0  ;;  %s1051_s0 = inlined_call_operand.hbm [shape: f32[8,128], index: 0, kind: input, shape index: {}]   ;;  %s1052_s1 = inlined_call_operand.hbm [shape: f32[8,128], index: 1, kind: input, shape index: {}]   ;;  %s1053_s2 = inlined_call_operand.hbm [shape: f32[48,128], index: 2, kind: output, shape index: {}]  }
   0x1   :  { %8 = vsyncpa [#allocation6], 0 }
   0x2   :  { %9 = vsyncpa [#allocation4], 0  ;;  %s756_s9 = smov [#allocation2]   ;;  %s757_s11 = smov [#allocation5]  }
   0x3   :  { %s16_s10 = sshll.u32 %s756_s9, 4  ;;  %s26_s12 = sshll.u32 %s757_s11, 4  ;;  %s17_s10 = int_to_ptr.vmem [resolvable:$true] %s16_s10  ;;  %s27_s12 = int_to_ptr.vmem [resolvable:$true] %s26_s12 }
   0x4   :  { %s684_s15 = scalar_lea.hbm %s1051_s0, 128 }
   0x5   :  { %p685_p0 = scmp.ne.s32.totalorder %s1051_s0, %s684_s15  ;;  %p688_p1 = scmp.lt.u32.totalorder %s684_s15, %s1051_s0 }
   0x7   :  { %p690_p2 = pnand %p688_p1, %p685_p0 }
   0x9   :  { %693 = shalt.err (!%p690_p2)
}
   0xa   :  { %s694_s20 = scalar_lea.vmem %s17_s10, 128  ;;  %p699_p4 = scmp.lt.s32.totalorder %s17_s10, %s17_s10 }
   0xb   :  { %p695_p3 = scmp.ne.s32.totalorder %s17_s10, %s694_s20  ;;  %p700_p5 = scmp.lt.s32.totalorder %s694_s20, %s694_s20 }
   0xd   :  { %p701_p6 = por %p700_p5, %p699_p4 }
   0xf   :  { %p702_p7 = pnand %p701_p6, %p695_p3 }
  0x11   :  { %705 = shalt.err (!%p702_p7)
}
  0x12   :  { %19 = dma.hbm_to_vmem [thread:$0]  %s1051_s0, 128, %s17_s10, [#allocation3]  }
  0x13   :  { %s706_s25 = scalar_lea.hbm %s1052_s1, 128 }
  0x14   :  { %p707_p8 = scmp.ne.s32.totalorder %s1052_s1, %s706_s25  ;;  %p710_p9 = scmp.lt.u32.totalorder %s706_s25, %s1052_s1 }
  0x16   :  { %p712_p10 = pnand %p710_p9, %p707_p8 }
  0x18   :  { %715 = shalt.err (!%p712_p10)
}
  0x19   :  { %s716_s30 = scalar_lea.vmem %s27_s12, 128  ;;  %p721_p12 = scmp.lt.s32.totalorder %s27_s12, %s27_s12 }
  0x1a   :  { %p717_p11 = scmp.ne.s32.totalorder %s27_s12, %s716_s30  ;;  %p722_p13 = scmp.lt.s32.totalorder %s716_s30, %s716_s30 }
  0x1c   :  { %p723_p0 = por %p722_p13, %p721_p12 }
  0x1e   :  { %p724_p1 = pnand %p723_p0, %p717_p11 }
  0x20   :  { %727 = shalt.err (!%p724_p1)
}
  0x21   :  { %29 = dma.hbm_to_vmem [thread:$0]  %s1052_s1, 128, %s27_s12, [#allocation6]  }
  0x22   :  { %750 = dma.done.wait [#allocation3], 128  }
  0x23   :  { %751 = vsyncadd [#allocation3], 4294967168 }
  0x24   :  { %752 = dma.done.wait [#allocation6], 128  }
  0x25   :  { %753 = vsyncadd [#allocation6], 4294967168  ;;  %v48_v0 = vlaneseq  ;;  %v758_v1 = vmov 0.0   ;;  %v46_v6 = vld [vmem:[#allocation2] sm:$0xff]  ;;  %v47_v18 = vld [vmem:[#allocation5] sm:$0xff]  ;;  %s759_s1 = smov [#allocation7]  }
  0x26   :  { %40 = vst [vmem:[#allocation7] sm:$0xff] %v758_v1  ;;  %41 = vst [vmem:[#allocation7 + $0x8] sm:$0xff] %v758_v1  ;;  %v653_v7 = vmul.f32 -1.442695, %v46_v6  ;;  %v96_v9 = vmul.f32 %v46_v6, %v46_v6  ;;  %v66_v21 = vmul.f32 0.95, %v47_v18 }
  0x27   :  { %42 = vst [vmem:[#allocation7 + $0x10] sm:$0xff] %v758_v1  ;;  %43 = vst [vmem:[#allocation7 + $0x18] sm:$0xff] %v758_v1  ;;  %v49_v2 = vshrl.u32 %v48_v0, 7  ;;  %v51_v3 = vand.u32 127, %v48_v0  ;;  %vm106_vm1 = vcmp.ne.f32.partialorder %v47_v18, 0.0  ;;  %s639_s4 = sshll.u32 %s759_s1, 4  ;;  %s640_s4 = int_to_ptr.vmem [resolvable:$true] %s639_s4 }
  0x28   :  { %44 = vst [vmem:[#allocation7 + $0x20] sm:$0xff] %v758_v1  ;;  %45 = vst [vmem:[#allocation7 + $0x28] sm:$0xff] %v758_v1  ;;  %676 = vpow2.f32 %v653_v7  ;;  %v67_v23 = vadd.f32 0.025, %v66_v21  ;;  %v819_v26 = vsel %vm106_vm1, 1.0, %v758_v1  ;;  %s728_s5 = scalar_lea.vmem %s640_s4, 768  ;;  %p733_p3 = scmp.lt.s32.totalorder %s640_s4, %s640_s4 }
  0x29   :  { %v53_v4 = vmul.u32 128, %v49_v2  ;;  %p729_p2 = scmp.ne.s32.totalorder %s640_s4, %s728_s5  ;;  %p734_p4 = scmp.lt.s32.totalorder %s728_s5, %s728_s5 }
  0x2a   :  { %v81_v25 = vsub.f32 1.0, %v67_v23 }
  0x2b   :  { %v807_v5 = vadd.s32 %v53_v4, %v51_v3  ;;  %p735_p5 = por %p734_p4, %p733_p3 }
  0x2d   :  { %vm57_vm0 = vcmp.lt.s32.totalorder %v807_v5, 640  ;;  %v95_v19 = vld [vmem:[#allocation7 + $0x1] sm:$0x1]  ;;  %p736_p6 = pnand %p735_p5, %p729_p2 }
  0x2e   :  { %v813_v8 = vsel %vm57_vm0, 1.0, %v758_v1 }
  0x2f   :  { %v97_v10 = vmul.f32 %v813_v8, %v96_v9  ;;  %v115_v9 = vld [vmem:[#allocation7 + $0x2] sm:$0x1]  ;;  %v554_v5 = vld [vmem:[#allocation7 + $0x2c] sm:$0x1] }
  0x31   :  { %v98_v11 = vrot.slane %v97_v10, 4 }
  0x32   :  { %v677_v15 = vpop.eup %676 }
  0x33   :  { %v99_v12 = vadd.f32 %v98_v11, %v97_v10  ;;  %v63_v16 = vadd.f32 1.0, %v677_v15 }
  0x35   :  { %v100_v13 = vrot.slane %v99_v12, 2  ;;  %678 = vrcp.f32 %v63_v16 }
  0x37   :  { %v101_v14 = vadd.f32 %v100_v13, %v99_v12 }
  0x39   :  { %v102_v17 = vrot.slane %v101_v14, 1 }
  0x3b   :  { %v103_v20 = vadd.f32 %v102_v17, %v101_v14 }
  0x3d   :  { %v104_v22 = vadd.f32 %v103_v20, %v95_v19  ;;  %v124_v19 = vld [vmem:[#allocation7 + $0x11] sm:$0x1] }
  0x3f   :  { %105 = vst [vmem:[#allocation7 + $0x1] sm:$0x1] %v104_v22  ;;  %v816_v24 = vpop.eup %678 }
  0x40   :  { %v68_v27 = vadd.f32 1e-08, %v816_v24  ;;  %v71_v28 = vsub.f32 1.0, %v816_v24  ;;  %v79_v29 = vmul.f32 %v816_v24, %v816_v24  ;;  %vm109_vm2 = vcmp.gt.f32.partialorder %v816_v24, 0.0 }
  0x41   :  { %vm110_vm3 = vcmp.le.f32.partialorder %v816_v24, 0.06666667  ;;  %vm144_vm4 = vcmp.gt.f32.partialorder %v816_v24, 0.06666667  ;;  %vm145_vm5 = vcmp.le.f32.partialorder %v816_v24, 0.13333334 }
  0x42   :  { %680 = vlog2.f32 %v68_v27  ;;  %v72_v30 = vadd.f32 1e-08, %v71_v28  ;;  %v75_v31 = vmul.f32 %v71_v28, %v71_v28  ;;  %v80_v32 = vmul.f32 0.75, %v79_v29  ;;  %vm111_vm6 = vmand %vm109_vm2, %vm110_vm3 }
  0x43   :  { %vm112_vm7 = vmand %vm111_vm6, %vm57_vm0  ;;  %vm179_vm8 = vcmp.gt.f32.partialorder %v816_v24, 0.13333334  ;;  %vm180_vm9 = vcmp.le.f32.partialorder %v816_v24, 0.2  ;;  %vm214_vm11 = vcmp.gt.f32.partialorder %v816_v24, 0.2 }
  0x44   :  { %682 = vlog2.f32 %v72_v30  ;;  %v76_v33 = vmul.f32 -0.25, %v75_v31  ;;  %v655_v34 = vsel %vm112_vm7, 1.0, %v758_v1  ;;  %vm146_vm10 = vmand %vm144_vm4, %vm145_vm5  ;;  %v82_v35 = vmul.f32 %v81_v25, %v80_v32  ;;  %v134_v30 = vld [vmem:[#allocation7 + $0x20] sm:$0x1]  ;;  %v150_v31 = vld [vmem:[#allocation7 + $0x3] sm:$0x1] }
  0x45   :  { %v116_v36 = vrot.slane %v655_v34, 4  ;;  %v125_v37 = vmul.f32 %v816_v24, %v655_v34  ;;  %v135_v38 = vmul.f32 %v655_v34, %v819_v26  ;;  %vm147_vm12 = vmand %vm146_vm10, %vm57_vm0  ;;  %vm215_vm14 = vcmp.le.f32.partialorder %v816_v24, 0.26666668 }
  0x46   :  { %v77_v39 = vmul.f32 %v76_v33, %v67_v23  ;;  %v656_v40 = vsel %vm147_vm12, 1.0, %v758_v1  ;;  %vm181_vm13 = vmand %vm179_vm8, %vm180_vm9  ;;  %vm249_vm15 = vcmp.gt.f32.partialorder %v816_v24, 0.26666668  ;;  %vm250_vm2 = vcmp.le.f32.partialorder %v816_v24, 0.33333334 }
  0x47   :  { %v117_v41 = vadd.f32 %v655_v34, %v116_v36  ;;  %v126_v42 = vrot.slane %v125_v37, 4  ;;  %v136_v43 = vrot.slane %v135_v38, 4  ;;  %v151_v44 = vrot.slane %v656_v40, 4  ;;  %vm182_vm1 = vmand %vm181_vm13, %vm57_vm0 }
  0x48   :  { %v160_v45 = vmul.f32 %v816_v24, %v656_v40  ;;  %v170_v46 = vmul.f32 %v656_v40, %v819_v26  ;;  %v847_v47 = vsel %vm182_vm1, 1.0, %v758_v1  ;;  %vm858_vm3 = vmand %vm214_vm11, %vm215_vm14  ;;  %vm284_vm7 = vcmp.gt.f32.partialorder %v816_v24, 0.33333334 }
  0x49   :  { %v118_v48 = vrot.slane %v117_v41, 2  ;;  %v127_v49 = vadd.f32 %v126_v42, %v125_v37  ;;  %v137_v50 = vadd.f32 %v136_v43, %v135_v38  ;;  %v152_v51 = vadd.f32 %v656_v40, %v151_v44  ;;  %vm866_vm4 = vmand %vm249_vm15, %vm250_vm2  ;;  %v159_v40 = vld [vmem:[#allocation7 + $0x12] sm:$0x1]  ;;  %v255_v44 = vld [vmem:[#allocation7 + $0x6] sm:$0x1] }
  0x4a   :  { %v161_v52 = vrot.slane %v160_v45, 4  ;;  %v171_v53 = vrot.slane %v170_v46, 4  ;;  %v186_v54 = vrot.slane %v847_v47, 4  ;;  %v195_v55 = vmul.f32 %v816_v24, %v847_v47  ;;  %vm874_vm5 = vmand %vm858_vm3, %vm57_vm0 }
  0x4b   :  { %v119_v56 = vadd.f32 %v118_v48, %v117_v41  ;;  %v128_v57 = vrot.slane %v127_v49, 2  ;;  %v138_v58 = vrot.slane %v137_v50, 2  ;;  %v153_v59 = vrot.slane %v152_v51, 2  ;;  %v169_v41 = vld [vmem:[#allocation7 + $0x21] sm:$0x1]  ;;  %vm882_vm6 = vmand %vm866_vm4, %vm57_vm0 }
  0x4c   :  { %v681_v60 = vpop.eup %680  ;;  %v162_v61 = vadd.f32 %v161_v52, %v160_v45  ;;  %v172_v62 = vadd.f32 %v171_v53, %v170_v46  ;;  %v187_v63 = vadd.f32 %v847_v47, %v186_v54  ;;  %v196_v0 = vrot.slane %v195_v55, 4 }
  0x4d   :  { %v70_v2 = vmul.f32 0.6931472, %v681_v60  ;;  %v120_v3 = vrot.slane %v119_v56, 1  ;;  %v129_v4 = vadd.f32 %v128_v57, %v127_v49  ;;  %v139_v6 = vadd.f32 %v138_v58, %v137_v50  ;;  %v185_v50 = vld [vmem:[#allocation7 + $0x4] sm:$0x1] }
  0x4e   :  { %v683_v7 = vpop.eup %682  ;;  %v154_v10 = vadd.f32 %v153_v59, %v152_v51  ;;  %v163_v11 = vrot.slane %v162_v61, 2  ;;  %v173_v12 = vrot.slane %v172_v62, 2  ;;  %v188_v13 = vrot.slane %v187_v63, 2 }
  0x4f   :  { %v74_v14 = vmul.f32 0.6931472, %v683_v7  ;;  %v78_v15 = vmul.f32 %v77_v39, %v70_v2  ;;  %v121_v16 = vadd.f32 %v120_v3, %v119_v56  ;;  %v130_v17 = vrot.slane %v129_v4, 1  ;;  %v194_v7 = vld [vmem:[#allocation7 + $0x13] sm:$0x1] }
  0x50   :  { %v140_v20 = vrot.slane %v139_v6, 1  ;;  %v155_v21 = vrot.slane %v154_v10, 1  ;;  %v164_v22 = vadd.f32 %v163_v11, %v162_v61  ;;  %v174_v23 = vadd.f32 %v173_v12, %v172_v62 }
  0x51   :  { %v83_v27 = vmul.f32 %v82_v35, %v74_v14  ;;  %v122_v28 = vadd.f32 %v121_v16, %v115_v9  ;;  %v131_v29 = vadd.f32 %v130_v17, %v129_v4  ;;  %v189_v32 = vadd.f32 %v188_v13, %v187_v63 }
  0x52   :  { %v141_v33 = vadd.f32 %v140_v20, %v139_v6  ;;  %v156_v34 = vadd.f32 %v155_v21, %v154_v10  ;;  %v165_v36 = vrot.slane %v164_v22, 1  ;;  %v175_v37 = vrot.slane %v174_v23, 1 }
  0x53   :  { %v84_v39 = vsub.f32 %v78_v15, %v83_v27  ;;  %123 = vst [vmem:[#allocation7 + $0x2] sm:$0x1] %v122_v28  ;;  %v132_v35 = vadd.f32 %v131_v29, %v124_v19  ;;  %v190_v42 = vrot.slane %v189_v32, 1  ;;  %v197_v43 = vadd.f32 %v196_v0, %v195_v55 }
  0x54   :  { %v142_v45 = vadd.f32 %v141_v33, %v134_v30  ;;  %v157_v46 = vadd.f32 %v156_v34, %v150_v31  ;;  %v166_v48 = vadd.f32 %v165_v36, %v164_v22  ;;  %v176_v49 = vadd.f32 %v175_v37, %v174_v23  ;;  %v85_v36 = vld [vmem:[#allocation7] sm:$0x1]  ;;  %v204_v37 = vld [vmem:[#allocation7 + $0x22] sm:$0x1] }
  0x55   :  { %v86_v51 = vmul.f32 %v813_v8, %v84_v39  ;;  %133 = vst [vmem:[#allocation7 + $0x11] sm:$0x1] %v132_v35  ;;  %v191_v52 = vadd.f32 %v190_v42, %v189_v32  ;;  %v198_v53 = vrot.slane %v197_v43, 2  ;;  %v205_v54 = vmul.f32 %v847_v47, %v819_v26 }
  0x56   :  { %143 = vst [vmem:[#allocation7 + $0x20] sm:$0x1] %v142_v45  ;;  %158 = vst [vmem:[#allocation7 + $0x3] sm:$0x1] %v157_v46  ;;  %v167_v55 = vadd.f32 %v166_v48, %v159_v40  ;;  %v177_v56 = vadd.f32 %v176_v49, %v169_v41  ;;  %v658_v57 = vsel %vm874_vm5, 1.0, %v758_v1  ;;  %v659_v58 = vsel %vm882_vm6, 1.0, %v758_v1 }
  0x57   :  { %v87_v59 = vrot.slane %v86_v51, 4  ;;  %v192_v8 = vadd.f32 %v191_v52, %v185_v50  ;;  %v199_v60 = vadd.f32 %v198_v53, %v197_v43  ;;  %v206_v61 = vrot.slane %v205_v54, 4  ;;  %v220_v43 = vld [vmem:[#allocation7 + $0x5] sm:$0x1] }
  0x58   :  { %168 = vst [vmem:[#allocation7 + $0x12] sm:$0x1] %v167_v55  ;;  %178 = vst [vmem:[#allocation7 + $0x21] sm:$0x1] %v177_v56  ;;  %v221_v62 = vrot.slane %v658_v57, 4  ;;  %v230_v47 = vmul.f32 %v816_v24, %v658_v57  ;;  %v240_v63 = vmul.f32 %v658_v57, %v819_v26  ;;  %v256_v0 = vrot.slane %v659_v58, 4 }
  0x59   :  { %v88_v2 = vadd.f32 %v87_v59, %v86_v51  ;;  %193 = vst [vmem:[#allocation7 + $0x4] sm:$0x1] %v192_v8  ;;  %v200_v3 = vrot.slane %v199_v60, 1  ;;  %v207_v4 = vadd.f32 %v206_v61, %v205_v54  ;;  %v265_v6 = vmul.f32 %v816_v24, %v659_v58  ;;  %v229_v54 = vld [vmem:[#allocation7 + $0x14] sm:$0x1] }
  0x5a   :  { %v222_v9 = vadd.f32 %v658_v57, %v221_v62  ;;  %v231_v10 = vrot.slane %v230_v47, 4  ;;  %v241_v11 = vrot.slane %v240_v63, 4  ;;  %v257_v12 = vadd.f32 %v659_v58, %v256_v0  ;;  %v239_v55 = vld [vmem:[#allocation7 + $0x23] sm:$0x1]  ;;  %v264_v61 = vld [vmem:[#allocation7 + $0x15] sm:$0x1] }
  0x5b   :  { %v89_v13 = vrot.slane %v88_v2, 2  ;;  %v201_v14 = vadd.f32 %v200_v3, %v199_v60  ;;  %v208_v15 = vrot.slane %v207_v4, 2  ;;  %v266_v16 = vrot.slane %v265_v6, 4 }
  0x5c   :  { %v223_v17 = vrot.slane %v222_v9, 2  ;;  %v232_v18 = vadd.f32 %v231_v10, %v230_v47  ;;  %v242_v19 = vadd.f32 %v241_v11, %v240_v63  ;;  %v258_v20 = vrot.slane %v257_v12, 2 }
  0x5d   :  { %v90_v21 = vadd.f32 %v89_v13, %v88_v2  ;;  %v202_v22 = vadd.f32 %v201_v14, %v194_v7  ;;  %v209_v23 = vadd.f32 %v208_v15, %v207_v4  ;;  %v267_v25 = vadd.f32 %v266_v16, %v265_v6  ;;  %v274_v6 = vld [vmem:[#allocation7 + $0x24] sm:$0x1] }
  0x5e   :  { %v224_v27 = vadd.f32 %v223_v17, %v222_v9  ;;  %v233_v28 = vrot.slane %v232_v18, 2  ;;  %v243_v29 = vrot.slane %v242_v19, 2  ;;  %v259_v30 = vadd.f32 %v258_v20, %v257_v12 }
  0x5f   :  { %v91_v31 = vrot.slane %v90_v21, 1  ;;  %203 = vst [vmem:[#allocation7 + $0x13] sm:$0x1] %v202_v22  ;;  %v210_v32 = vrot.slane %v209_v23, 1  ;;  %v268_v33 = vrot.slane %v267_v25, 2  ;;  %v275_v34 = vmul.f32 %v659_v58, %v819_v26 }
  0x60   :  { %v225_v38 = vrot.slane %v224_v27, 1  ;;  %v234_v39 = vadd.f32 %v233_v28, %v232_v18  ;;  %v244_v35 = vadd.f32 %v243_v29, %v242_v19  ;;  %v260_v40 = vrot.slane %v259_v30, 1 }
  0x61   :  { %v92_v41 = vadd.f32 %v91_v31, %v90_v21  ;;  %v211_v42 = vadd.f32 %v210_v32, %v209_v23  ;;  %v269_v45 = vadd.f32 %v268_v33, %v267_v25  ;;  %v276_v46 = vrot.slane %v275_v34, 4 }
  0x62   :  { %v226_v48 = vadd.f32 %v225_v38, %v224_v27  ;;  %v235_v49 = vrot.slane %v234_v39, 1  ;;  %v245_v50 = vrot.slane %v244_v35, 1  ;;  %v261_v51 = vadd.f32 %v260_v40, %v259_v30 }
  0x63   :  { %v93_v52 = vadd.f32 %v92_v41, %v85_v36  ;;  %v212_v53 = vadd.f32 %v211_v42, %v204_v37  ;;  %v270_v56 = vrot.slane %v269_v45, 1  ;;  %v277_v57 = vadd.f32 %v276_v46, %v275_v34 }
  0x64   :  { %v227_v58 = vadd.f32 %v226_v48, %v220_v43  ;;  %v236_v59 = vadd.f32 %v235_v49, %v234_v39  ;;  %v246_v8 = vadd.f32 %v245_v50, %v244_v35  ;;  %v262_v60 = vadd.f32 %v261_v51, %v255_v44  ;;  %v290_v43 = vld [vmem:[#allocation7 + $0x7] sm:$0x1] }
  0x65   :  { %94 = vst [vmem:[#allocation7] sm:$0x1] %v93_v52  ;;  %213 = vst [vmem:[#allocation7 + $0x22] sm:$0x1] %v212_v53  ;;  %v271_v62 = vadd.f32 %v270_v56, %v269_v45  ;;  %v278_v47 = vrot.slane %v277_v57, 2 }
  0x66   :  { %vm285_vm8 = vcmp.le.f32.partialorder %v816_v24, 0.4  ;;  %vm319_vm9 = vcmp.gt.f32.partialorder %v816_v24, 0.4  ;;  %228 = vst [vmem:[#allocation7 + $0x5] sm:$0x1] %v227_v58  ;;  %v237_v63 = vadd.f32 %v236_v59, %v229_v54  ;;  %v247_v0 = vadd.f32 %v246_v8, %v239_v55 }
  0x67   :  { %263 = vst [vmem:[#allocation7 + $0x6] sm:$0x1] %v262_v60  ;;  %vm286_vm10 = vmand %vm284_vm7, %vm285_vm8  ;;  %vm320_vm11 = vcmp.le.f32.partialorder %v816_v24, 0.46666667  ;;  %v272_v2 = vadd.f32 %v271_v62, %v264_v61  ;;  %v279_v3 = vadd.f32 %v278_v47, %v277_v57  ;;  %vm354_vm13 = vcmp.gt.f32.partialorder %v816_v24, 0.46666667 }
  0x68   :  { %vm287_vm12 = vmand %vm286_vm10, %vm57_vm0  ;;  %vm355_vm14 = vcmp.le.f32.partialorder %v816_v24, 0.53333336  ;;  %238 = vst [vmem:[#allocation7 + $0x14] sm:$0x1] %v237_v63  ;;  %vm389_vm1 = vcmp.gt.f32.partialorder %v816_v24, 0.53333336 }
  0x69   :  { %248 = vst [vmem:[#allocation7 + $0x23] sm:$0x1] %v247_v0  ;;  %v660_v4 = vsel %vm287_vm12, 1.0, %v758_v1  ;;  %vm321_vm15 = vmand %vm319_vm9, %vm320_vm11  ;;  %vm390_vm2 = vcmp.le.f32.partialorder %v816_v24, 0.6  ;;  %v280_v7 = vrot.slane %v279_v3, 1 }
  0x6a   :  { %273 = vst [vmem:[#allocation7 + $0x15] sm:$0x1] %v272_v2  ;;  %v291_v9 = vrot.slane %v660_v4, 4  ;;  %v300_v10 = vmul.f32 %v816_v24, %v660_v4  ;;  %v310_v11 = vmul.f32 %v660_v4, %v819_v26  ;;  %vm322_vm3 = vmand %vm321_vm15, %vm57_vm0  ;;  %vm424_vm5 = vcmp.gt.f32.partialorder %v816_v24, 0.6 }
  0x6b   :  { %v661_v12 = vsel %vm322_vm3, 1.0, %v758_v1  ;;  %vm356_vm4 = vmand %vm354_vm13, %vm355_vm14  ;;  %vm425_vm6 = vcmp.le.f32.partialorder %v816_v24, 0.6666667  ;;  %v281_v13 = vadd.f32 %v280_v7, %v279_v3  ;;  %v299_v55 = vld [vmem:[#allocation7 + $0x16] sm:$0x1] }
  0x6c   :  { %v292_v14 = vadd.f32 %v660_v4, %v291_v9  ;;  %v301_v15 = vrot.slane %v300_v10, 4  ;;  %v311_v16 = vrot.slane %v310_v11, 4  ;;  %vm357_vm7 = vmand %vm356_vm4, %vm57_vm0  ;;  %v326_v17 = vrot.slane %v661_v12, 4  ;;  %v309_v56 = vld [vmem:[#allocation7 + $0x25] sm:$0x1] }
  0x6d   :  { %v335_v18 = vmul.f32 %v816_v24, %v661_v12  ;;  %v345_v19 = vmul.f32 %v661_v12, %v819_v26  ;;  %v662_v20 = vsel %vm357_vm7, 1.0, %v758_v1  ;;  %v282_v21 = vadd.f32 %v281_v13, %v274_v6  ;;  %vm935_vm8 = vmand %vm389_vm1, %vm390_vm2  ;;  %v325_v47 = vld [vmem:[#allocation7 + $0x8] sm:$0x1]  ;;  %v360_v13 = vld [vmem:[#allocation7 + $0x9] sm:$0x1] }
  0x6e   :  { %v293_v22 = vrot.slane %v292_v14, 2  ;;  %v302_v23 = vadd.f32 %v301_v15, %v300_v10  ;;  %v312_v25 = vadd.f32 %v311_v16, %v310_v11  ;;  %v327_v27 = vadd.f32 %v661_v12, %v326_v17  ;;  %vm943_vm9 = vmand %vm424_vm5, %vm425_vm6  ;;  %v334_v11 = vld [vmem:[#allocation7 + $0x17] sm:$0x1]  ;;  %v344_v12 = vld [vmem:[#allocation7 + $0x26] sm:$0x1] }
  0x6f   :  { %v336_v28 = vrot.slane %v335_v18, 4  ;;  %v346_v29 = vrot.slane %v345_v19, 4  ;;  %v361_v30 = vrot.slane %v662_v20, 4  ;;  %283 = vst [vmem:[#allocation7 + $0x24] sm:$0x1] %v282_v21  ;;  %v370_v34 = vmul.f32 %v816_v24, %v662_v20  ;;  %vm951_vm10 = vmand %vm935_vm8, %vm57_vm0 }
  0x70   :  { %v294_v31 = vadd.f32 %v293_v22, %v292_v14  ;;  %v303_v32 = vrot.slane %v302_v23, 2  ;;  %v313_v33 = vrot.slane %v312_v25, 2  ;;  %v328_v36 = vrot.slane %v327_v27, 2  ;;  %vm960_vm12 = vmand %vm943_vm9, %vm57_vm0 }
  0x71   :  { %v337_v37 = vadd.f32 %v336_v28, %v335_v18  ;;  %v347_v38 = vadd.f32 %v346_v29, %v345_v19  ;;  %v362_v39 = vadd.f32 %v662_v20, %v361_v30  ;;  %v371_v42 = vrot.slane %v370_v34, 4  ;;  %v369_v29 = vld [vmem:[#allocation7 + $0x18] sm:$0x1] }
  0x72   :  { %v295_v35 = vrot.slane %v294_v31, 1  ;;  %v304_v40 = vadd.f32 %v303_v32, %v302_v23  ;;  %v314_v41 = vadd.f32 %v313_v33, %v312_v25  ;;  %v329_v44 = vadd.f32 %v328_v36, %v327_v27 }
  0x73   :  { %v338_v45 = vrot.slane %v337_v37, 2  ;;  %v348_v46 = vrot.slane %v347_v38, 2  ;;  %v363_v48 = vrot.slane %v362_v39, 2  ;;  %v372_v53 = vadd.f32 %v371_v42, %v370_v34 }
  0x74   :  { %v296_v50 = vadd.f32 %v295_v35, %v294_v31  ;;  %v305_v51 = vrot.slane %v304_v40, 1  ;;  %v315_v52 = vrot.slane %v314_v41, 1  ;;  %v330_v57 = vrot.slane %v329_v44, 1 }
  0x75   :  { %v339_v58 = vadd.f32 %v338_v45, %v337_v37  ;;  %v349_v59 = vadd.f32 %v348_v46, %v347_v38  ;;  %v364_v8 = vadd.f32 %v363_v48, %v362_v39  ;;  %v373_v63 = vrot.slane %v372_v53, 2 }
  0x76   :  { %v297_v60 = vadd.f32 %v296_v50, %v290_v43  ;;  %v306_v61 = vadd.f32 %v305_v51, %v304_v40  ;;  %v316_v62 = vadd.f32 %v315_v52, %v314_v41  ;;  %vm459_vm11 = vcmp.gt.f32.partialorder %v816_v24, 0.6666667 }
  0x77   :  { %v331_v2 = vadd.f32 %v330_v57, %v329_v44  ;;  %v340_v3 = vrot.slane %v339_v58, 1  ;;  %v350_v4 = vrot.slane %v349_v59, 1  ;;  %v365_v6 = vrot.slane %v364_v8, 1 }
  0x78   :  { %298 = vst [vmem:[#allocation7 + $0x7] sm:$0x1] %v297_v60  ;;  %v307_v9 = vadd.f32 %v306_v61, %v299_v55  ;;  %v317_v10 = vadd.f32 %v316_v62, %v309_v56  ;;  %v374_v14 = vadd.f32 %v373_v63, %v372_v53  ;;  %v380_v15 = vmul.f32 %v662_v20, %v819_v26 }
  0x79   :  { %v332_v16 = vadd.f32 %v331_v2, %v325_v47  ;;  %v341_v17 = vadd.f32 %v340_v3, %v339_v58  ;;  %v351_v18 = vadd.f32 %v350_v4, %v349_v59  ;;  %v366_v19 = vadd.f32 %v365_v6, %v364_v8  ;;  %v379_v58 = vld [vmem:[#allocation7 + $0x27] sm:$0x1]  ;;  %v395_v47 = vld [vmem:[#allocation7 + $0xa] sm:$0x1] }
  0x7a   :  { %308 = vst [vmem:[#allocation7 + $0x16] sm:$0x1] %v307_v9  ;;  %318 = vst [vmem:[#allocation7 + $0x25] sm:$0x1] %v317_v10  ;;  %v375_v21 = vrot.slane %v374_v14, 1  ;;  %v381_v22 = vrot.slane %v380_v15, 4 }
  0x7b   :  { %v663_v23 = vsel %vm951_vm10, 1.0, %v758_v1  ;;  %v664_v25 = vsel %vm960_vm12, 1.0, %v758_v1  ;;  %333 = vst [vmem:[#allocation7 + $0x8] sm:$0x1] %v332_v16  ;;  %v342_v27 = vadd.f32 %v341_v17, %v334_v11  ;;  %v352_v28 = vadd.f32 %v351_v18, %v344_v12  ;;  %v430_v12 = vld [vmem:[#allocation7 + $0xb] sm:$0x1] }
  0x7c   :  { %v367_v20 = vadd.f32 %v366_v19, %v360_v13  ;;  %v396_v30 = vrot.slane %v663_v23, 4  ;;  %v376_v31 = vadd.f32 %v375_v21, %v374_v14  ;;  %v382_v32 = vadd.f32 %v381_v22, %v380_v15  ;;  %v404_v15 = vld [vmem:[#allocation7 + $0x19] sm:$0x1]  ;;  %v414_v16 = vld [vmem:[#allocation7 + $0x28] sm:$0x1] }
  0x7d   :  { %v405_v33 = vmul.f32 %v816_v24, %v663_v23  ;;  %v415_v34 = vmul.f32 %v663_v23, %v819_v26  ;;  %343 = vst [vmem:[#allocation7 + $0x17] sm:$0x1] %v342_v27  ;;  %353 = vst [vmem:[#allocation7 + $0x26] sm:$0x1] %v352_v28  ;;  %v431_v37 = vrot.slane %v664_v25, 4  ;;  %v440_v38 = vmul.f32 %v816_v24, %v664_v25 }
  0x7e   :  { %368 = vst [vmem:[#allocation7 + $0x9] sm:$0x1] %v367_v20  ;;  %v397_v36 = vadd.f32 %v663_v23, %v396_v30  ;;  %v450_v39 = vmul.f32 %v664_v25, %v819_v26  ;;  %v377_v35 = vadd.f32 %v376_v31, %v369_v29  ;;  %v383_v40 = vrot.slane %v382_v32, 2  ;;  %v439_v23 = vld [vmem:[#allocation7 + $0x1a] sm:$0x1] }
  0x7f   :  { %v406_v41 = vrot.slane %v405_v33, 4  ;;  %v416_v42 = vrot.slane %v415_v34, 4  ;;  %v432_v44 = vadd.f32 %v664_v25, %v431_v37  ;;  %v441_v45 = vrot.slane %v440_v38, 4  ;;  %v449_v25 = vld [vmem:[#allocation7 + $0x29] sm:$0x1] }
  0x80   :  { %v398_v43 = vrot.slane %v397_v36, 2  ;;  %v451_v46 = vrot.slane %v450_v39, 4  ;;  %378 = vst [vmem:[#allocation7 + $0x18] sm:$0x1] %v377_v35  ;;  %v384_v48 = vadd.f32 %v383_v40, %v382_v32  ;;  %vm460_vm13 = vcmp.le.f32.partialorder %v816_v24, 0.73333335 }
  0x81   :  { %v407_v49 = vadd.f32 %v406_v41, %v405_v33  ;;  %v417_v50 = vadd.f32 %v416_v42, %v415_v34  ;;  %v433_v52 = vrot.slane %v432_v44, 2  ;;  %v442_v53 = vadd.f32 %v441_v45, %v440_v38  ;;  %vm461_vm14 = vmand %vm459_vm11, %vm460_vm13  ;;  %v465_v45 = vld [vmem:[#allocation7 + $0xc] sm:$0x1] }
  0x82   :  { %v399_v51 = vadd.f32 %v398_v43, %v397_v36  ;;  %v452_v54 = vadd.f32 %v451_v46, %v450_v39  ;;  %v385_v55 = vrot.slane %v384_v48, 1  ;;  %vm462_vm15 = vmand %vm461_vm14, %vm57_vm0  ;;  %vm494_vm1 = vcmp.gt.f32.partialorder %v816_v24, 0.73333335 }
  0x83   :  { %v408_v56 = vrot.slane %v407_v49, 2  ;;  %v418_v57 = vrot.slane %v417_v50, 2  ;;  %v434_v8 = vadd.f32 %v433_v52, %v432_v44  ;;  %v443_v60 = vrot.slane %v442_v53, 2 }
  0x84   :  { %v400_v59 = vrot.slane %v399_v51, 1  ;;  %v453_v61 = vrot.slane %v452_v54, 2  ;;  %v386_v62 = vadd.f32 %v385_v55, %v384_v48  ;;  %v665_v2 = vsel %vm462_vm15, 1.0, %v758_v1 }
  0x85   :  { %v409_v63 = vadd.f32 %v408_v56, %v407_v49  ;;  %v419_v0 = vadd.f32 %v418_v57, %v417_v50  ;;  %v435_v4 = vrot.slane %v434_v8, 1  ;;  %v444_v6 = vadd.f32 %v443_v60, %v442_v53 }
  0x86   :  { %v401_v3 = vadd.f32 %v400_v59, %v399_v51  ;;  %v454_v7 = vadd.f32 %v453_v61, %v452_v54  ;;  %v387_v9 = vadd.f32 %v386_v62, %v379_v58  ;;  %v466_v13 = vrot.slane %v665_v2, 4  ;;  %v474_v62 = vld [vmem:[#allocation7 + $0x1b] sm:$0x1] }
  0x87   :  { %v410_v10 = vrot.slane %v409_v63, 1  ;;  %v420_v11 = vrot.slane %v419_v0, 1  ;;  %v436_v17 = vadd.f32 %v435_v4, %v434_v8  ;;  %v445_v18 = vrot.slane %v444_v6, 1  ;;  %v484_v4 = vld [vmem:[#allocation7 + $0x2a] sm:$0x1] }
  0x88   :  { %v402_v14 = vadd.f32 %v401_v3, %v395_v47  ;;  %v455_v19 = vrot.slane %v454_v7, 1  ;;  %388 = vst [vmem:[#allocation7 + $0x27] sm:$0x1] %v387_v9  ;;  %v467_v27 = vadd.f32 %v665_v2, %v466_v13  ;;  %v475_v28 = vmul.f32 %v816_v24, %v665_v2 }
  0x89   :  { %v411_v21 = vadd.f32 %v410_v10, %v409_v63  ;;  %v421_v22 = vadd.f32 %v420_v11, %v419_v0  ;;  %v437_v20 = vadd.f32 %v436_v17, %v430_v12  ;;  %v446_v29 = vadd.f32 %v445_v18, %v444_v6 }
  0x8a   :  { %403 = vst [vmem:[#allocation7 + $0xa] sm:$0x1] %v402_v14  ;;  %v456_v30 = vadd.f32 %v455_v19, %v454_v7  ;;  %v485_v31 = vmul.f32 %v665_v2, %v819_v26  ;;  %v468_v34 = vrot.slane %v467_v27, 2  ;;  %v476_v36 = vrot.slane %v475_v28, 4 }
  0x8b   :  { %v412_v32 = vadd.f32 %v411_v21, %v404_v15  ;;  %v422_v33 = vadd.f32 %v421_v22, %v414_v16  ;;  %438 = vst [vmem:[#allocation7 + $0xb] sm:$0x1] %v437_v20  ;;  %v447_v37 = vadd.f32 %v446_v29, %v439_v23  ;;  %vm495_vm2 = vcmp.le.f32.partialorder %v816_v24, 0.8  ;;  %v500_v23 = vld [vmem:[#allocation7 + $0xd] sm:$0x1] }
  0x8c   :  { %v457_v38 = vadd.f32 %v456_v30, %v449_v25  ;;  %v486_v39 = vrot.slane %v485_v31, 4  ;;  %v469_v35 = vadd.f32 %v468_v34, %v467_v27  ;;  %v477_v40 = vadd.f32 %v476_v36, %v475_v28  ;;  %vm496_vm3 = vmand %vm494_vm1, %vm495_vm2  ;;  %v509_v34 = vld [vmem:[#allocation7 + $0x1c] sm:$0x1]  ;;  %v519_v36 = vld [vmem:[#allocation7 + $0x2b] sm:$0x1] }
  0x8d   :  { %413 = vst [vmem:[#allocation7 + $0x19] sm:$0x1] %v412_v32  ;;  %423 = vst [vmem:[#allocation7 + $0x28] sm:$0x1] %v422_v33  ;;  %vm529_vm4 = vcmp.gt.f32.partialorder %v816_v24, 0.8 }
  0x8e   :  { %vm530_vm5 = vcmp.le.f32.partialorder %v816_v24, 0.8666667  ;;  %448 = vst [vmem:[#allocation7 + $0x1a] sm:$0x1] %v447_v37  ;;  %458 = vst [vmem:[#allocation7 + $0x29] sm:$0x1] %v457_v38  ;;  %v487_v41 = vadd.f32 %v486_v39, %v485_v31 }
  0x8f   :  { %vm497_vm6 = vmand %vm496_vm3, %vm57_vm0  ;;  %vm564_vm7 = vcmp.gt.f32.partialorder %v816_v24, 0.8666667  ;;  %v470_v42 = vrot.slane %v469_v35, 1  ;;  %v478_v43 = vrot.slane %v477_v40, 2  ;;  %vm565_vm9 = vcmp.le.f32.partialorder %v816_v24, 0.93333334 }
  0x90   :  { %v666_v44 = vsel %vm497_vm6, 1.0, %v758_v1  ;;  %vm531_vm8 = vmand %vm529_vm4, %vm530_vm5  ;;  %vm600_vm10 = vcmp.le.f32.partialorder %v816_v24, 1.0  ;;  %v488_v46 = vrot.slane %v487_v41, 2  ;;  %vm599_vm12 = vcmp.gt.f32.partialorder %v816_v24, 0.93333334 }
  0x91   :  { %v501_v48 = vrot.slane %v666_v44, 4  ;;  %v510_v49 = vmul.f32 %v816_v24, %v666_v44  ;;  %v520_v50 = vmul.f32 %v666_v44, %v819_v26  ;;  %vm532_vm11 = vmand %vm531_vm8, %vm57_vm0  ;;  %v471_v51 = vadd.f32 %v470_v42, %v469_v35 }
  0x92   :  { %v479_v52 = vadd.f32 %v478_v43, %v477_v40  ;;  %v667_v53 = vsel %vm532_vm11, 1.0, %v758_v1  ;;  %v489_v54 = vadd.f32 %v488_v46, %v487_v41  ;;  %vm1006_vm13 = vmand %vm564_vm7, %vm565_vm9  ;;  %v535_v43 = vld [vmem:[#allocation7 + $0xe] sm:$0x1] }
  0x93   :  { %v502_v55 = vadd.f32 %v666_v44, %v501_v48  ;;  %v511_v56 = vrot.slane %v510_v49, 4  ;;  %v521_v57 = vrot.slane %v520_v50, 4  ;;  %v472_v58 = vadd.f32 %v471_v51, %v465_v45  ;;  %vm567_vm14 = vmand %vm1006_vm13, %vm57_vm0 }
  0x94   :  { %v480_v59 = vrot.slane %v479_v52, 1  ;;  %v536_v8 = vrot.slane %v667_v53, 4  ;;  %v545_v60 = vmul.f32 %v816_v24, %v667_v53  ;;  %v490_v47 = vrot.slane %v489_v54, 1  ;;  %vm1020_vm15 = vmand %vm599_vm12, %vm600_vm10 }
  0x95   :  { %v503_v63 = vrot.slane %v502_v55, 2  ;;  %v512_v0 = vadd.f32 %v511_v56, %v510_v49  ;;  %v522_v2 = vadd.f32 %v521_v57, %v520_v50  ;;  %473 = vst [vmem:[#allocation7 + $0xc] sm:$0x1] %v472_v58  ;;  %v555_v9 = vmul.f32 %v667_v53, %v819_v26  ;;  %vm1029_vm1 = vmand %vm1020_vm15, %vm57_vm0 }
  0x96   :  { %v481_v3 = vadd.f32 %v480_v59, %v479_v52  ;;  %v537_v6 = vadd.f32 %v667_v53, %v536_v8  ;;  %v546_v7 = vrot.slane %v545_v60, 4  ;;  %v491_v10 = vadd.f32 %v490_v47, %v489_v54  ;;  %v544_v53 = vld [vmem:[#allocation7 + $0x1d] sm:$0x1] }
  0x97   :  { %v504_v11 = vadd.f32 %v503_v63, %v502_v55  ;;  %v513_v12 = vrot.slane %v512_v0, 2  ;;  %v523_v13 = vrot.slane %v522_v2, 2  ;;  %v556_v17 = vrot.slane %v555_v9, 4 }
  0x98   :  { %v482_v14 = vadd.f32 %v481_v3, %v474_v62  ;;  %v538_v15 = vrot.slane %v537_v6, 2  ;;  %v547_v16 = vadd.f32 %v546_v7, %v545_v60  ;;  %v492_v18 = vadd.f32 %v491_v10, %v484_v4 }
  0x99   :  { %v505_v19 = vrot.slane %v504_v11, 1  ;;  %v514_v21 = vadd.f32 %v513_v12, %v512_v0  ;;  %v524_v22 = vadd.f32 %v523_v13, %v522_v2  ;;  %v557_v28 = vadd.f32 %v556_v17, %v555_v9  ;;  %v570_v9 = vld [vmem:[#allocation7 + $0xf] sm:$0x1] }
  0x9a   :  { %483 = vst [vmem:[#allocation7 + $0x1b] sm:$0x1] %v482_v14  ;;  %v539_v25 = vadd.f32 %v538_v15, %v537_v6  ;;  %v548_v27 = vrot.slane %v547_v16, 2  ;;  %v668_v20 = vsel %vm567_vm14, 1.0, %v758_v1  ;;  %493 = vst [vmem:[#allocation7 + $0x2a] sm:$0x1] %v492_v18 }
  0x9b   :  { %v506_v29 = vadd.f32 %v505_v19, %v504_v11  ;;  %v515_v30 = vrot.slane %v514_v21, 1  ;;  %v525_v31 = vrot.slane %v524_v22, 1  ;;  %v571_v32 = vrot.slane %v668_v20, 4  ;;  %v579_v18 = vld [vmem:[#allocation7 + $0x1e] sm:$0x1] }
  0x9c   :  { %v540_v37 = vrot.slane %v539_v25, 1  ;;  %v549_v38 = vadd.f32 %v548_v27, %v547_v16  ;;  %v558_v39 = vrot.slane %v557_v28, 2  ;;  %v580_v35 = vmul.f32 %v816_v24, %v668_v20 }
  0x9d   :  { %v507_v40 = vadd.f32 %v506_v29, %v500_v23  ;;  %v516_v41 = vadd.f32 %v515_v30, %v514_v21  ;;  %v526_v42 = vadd.f32 %v525_v31, %v524_v22  ;;  %v572_v44 = vadd.f32 %v668_v20, %v571_v32  ;;  %v605_v31 = vld [vmem:[#allocation7 + $0x10] sm:$0x1] }
  0x9e   :  { %v541_v45 = vadd.f32 %v540_v37, %v539_v25  ;;  %v550_v46 = vrot.slane %v549_v38, 1  ;;  %v559_v48 = vadd.f32 %v558_v39, %v557_v28  ;;  %v581_v49 = vrot.slane %v580_v35, 4 }
  0x9f   :  { %508 = vst [vmem:[#allocation7 + $0xd] sm:$0x1] %v507_v40  ;;  %v517_v51 = vadd.f32 %v516_v41, %v509_v34  ;;  %v527_v52 = vadd.f32 %v526_v42, %v519_v36  ;;  %v573_v54 = vrot.slane %v572_v44, 2  ;;  %v590_v55 = vmul.f32 %v668_v20, %v819_v26  ;;  %v589_v20 = vld [vmem:[#allocation7 + $0x2d] sm:$0x1] }
  0xa0   :  { %v542_v56 = vadd.f32 %v541_v45, %v535_v43  ;;  %v551_v57 = vadd.f32 %v550_v46, %v549_v38  ;;  %v560_v58 = vrot.slane %v559_v48, 1  ;;  %v582_v59 = vadd.f32 %v581_v49, %v580_v35  ;;  %v614_v35 = vld [vmem:[#allocation7 + $0x1f] sm:$0x1]  ;;  %v624_v40 = vld [vmem:[#allocation7 + $0x2e] sm:$0x1] }
  0xa1   :  { %518 = vst [vmem:[#allocation7 + $0x1c] sm:$0x1] %v517_v51  ;;  %528 = vst [vmem:[#allocation7 + $0x2b] sm:$0x1] %v527_v52  ;;  %v574_v8 = vadd.f32 %v573_v54, %v572_v44  ;;  %v591_v60 = vrot.slane %v590_v55, 4  ;;  %v669_v61 = vsel %vm1029_vm1, 1.0, %v758_v1 }
  0xa2   :  { %543 = vst [vmem:[#allocation7 + $0xe] sm:$0x1] %v542_v56  ;;  %v552_v62 = vadd.f32 %v551_v57, %v544_v53  ;;  %v561_v47 = vadd.f32 %v560_v58, %v559_v48  ;;  %v583_v63 = vrot.slane %v582_v59, 2  ;;  %v606_v0 = vrot.slane %v669_v61, 4 }
  0xa3   :  { %v575_v2 = vrot.slane %v574_v8, 1  ;;  %v592_v3 = vadd.f32 %v591_v60, %v590_v55  ;;  %v615_v4 = vmul.f32 %v816_v24, %v669_v61  ;;  %v625_v6 = vmul.f32 %v669_v61, %v819_v26 }
  0xa4   :  { %553 = vst [vmem:[#allocation7 + $0x1d] sm:$0x1] %v552_v62  ;;  %v562_v7 = vadd.f32 %v561_v47, %v554_v5  ;;  %v584_v10 = vadd.f32 %v583_v63, %v582_v59  ;;  %v607_v11 = vadd.f32 %v669_v61, %v606_v0 }
  0xa5   :  { %v576_v12 = vadd.f32 %v575_v2, %v574_v8  ;;  %v593_v13 = vrot.slane %v592_v3, 2  ;;  %v616_v14 = vrot.slane %v615_v4, 4  ;;  %v626_v1 = vrot.slane %v625_v6, 4 }
  0xa6   :  { %563 = vst [vmem:[#allocation7 + $0x2c] sm:$0x1] %v562_v7  ;;  %v585_v15 = vrot.slane %v584_v10, 1  ;;  %v608_v16 = vrot.slane %v607_v11, 2 }
  0xa7   :  { %v577_v17 = vadd.f32 %v576_v12, %v570_v9  ;;  %v594_v19 = vadd.f32 %v593_v13, %v592_v3  ;;  %v617_v21 = vadd.f32 %v616_v14, %v615_v4  ;;  %v627_v22 = vadd.f32 %v626_v1, %v625_v6 }
  0xa8   :  { %v586_v24 = vadd.f32 %v585_v15, %v584_v10  ;;  %v609_v23 = vadd.f32 %v608_v16, %v607_v11 }
  0xa9   :  { %578 = vst [vmem:[#allocation7 + $0xf] sm:$0x1] %v577_v17  ;;  %v595_v26 = vrot.slane %v594_v19, 1  ;;  %v618_v25 = vrot.slane %v617_v21, 2  ;;  %v628_v27 = vrot.slane %v627_v22, 2 }
  0xaa   :  { %v587_v28 = vadd.f32 %v586_v24, %v579_v18  ;;  %v610_v29 = vrot.slane %v609_v23, 1 }
  0xab   :  { %v596_v30 = vadd.f32 %v595_v26, %v594_v19  ;;  %v619_v32 = vadd.f32 %v618_v25, %v617_v21  ;;  %v629_v33 = vadd.f32 %v628_v27, %v627_v22 }
  0xac   :  { %588 = vst [vmem:[#allocation7 + $0x1e] sm:$0x1] %v587_v28  ;;  %v611_v34 = vadd.f32 %v610_v29, %v609_v23 }
  0xad   :  { %v597_v36 = vadd.f32 %v596_v30, %v589_v20  ;;  %v620_v37 = vrot.slane %v619_v32, 1  ;;  %v630_v38 = vrot.slane %v629_v33, 1 }
  0xae   :  { %v612_v39 = vadd.f32 %v611_v34, %v605_v31 }
  0xaf   :  { %598 = vst [vmem:[#allocation7 + $0x2d] sm:$0x1] %v597_v36  ;;  %v621_v41 = vadd.f32 %v620_v37, %v619_v32  ;;  %v631_v42 = vadd.f32 %v630_v38, %v629_v33 }
  0xb0   :  { %613 = vst [vmem:[#allocation7 + $0x10] sm:$0x1] %v612_v39 }
  0xb1   :  { %v622_v43 = vadd.f32 %v621_v41, %v614_v35  ;;  %v632_v44 = vadd.f32 %v631_v42, %v624_v40 }
  0xb3   :  { %623 = vst [vmem:[#allocation7 + $0x1f] sm:$0x1] %v622_v43  ;;  %633 = vst [vmem:[#allocation7 + $0x2e] sm:$0x1] %v632_v44 }
  0xb4   :  { %739 = shalt.err (!%p736_p6)
}
  0xb5   :  { %s740_s8 = scalar_lea.hbm %s1053_s2, 768 }
  0xb6   :  { %p741_p7 = scmp.ne.s32.totalorder %s1053_s2, %s740_s8  ;;  %p744_p8 = scmp.lt.u32.totalorder %s740_s8, %s1053_s2 }
  0xb8   :  { %p746_p9 = pnand %p744_p8, %p741_p7 }
  0xba   :  { %749 = shalt.err (!%p746_p9)
}
  0xbb   :  { %s760_s13 = smov 128   ;;  %s761_s14 = smov 8  }
  0xbc   :  { %645 = dma.vmem_to_hbm [thread:$0]  %s640_s4, 768, %s1053_s2, [#allocation4], %s760_s13, %s760_s13, %s761_s14  }
  0xbd   :  { %754 = dma.done.wait [#allocation4], 768  }
  0xbe   :  { %755 = vsyncadd [#allocation4], 4294966528 }
  0xbf   :  { %649 = vsyncpa [#allocation3], 1 }
  0xc0   :  { %650 = vsyncpa [#allocation6], 1 }
  0xc1   :  { %651 = vsyncpa [#allocation4], 1 }

</bundles_post_ra>
